<compile_context>
chip_gen: v7x
topology: tpu7x:2x2x1
jax: 0.10.0
libtpu: 0.0.40
codegen_flags: <defaults>
</compile_context>

<pallas_src>
import numpy as np
import jax
import jax.numpy as jnp
from jax.experimental import pallas as pl
from jax.experimental.pallas import tpu as pltpu

BN_EPS = 1e-5          # nn.BatchNorm2d default
CPAD = 128             # pad all channel-like dims to one vreg lane width
_FC_BLK = 8            # rows per spatial block in the FC gather (8-row aligned)

_VMEM = pl.BlockSpec(memory_space=pltpu.MemorySpace.VMEM)


def _conv_out(size, k, stride, pad):
    return (size + 2 * pad - k) // stride + 1


# ---------------------------------------------------------------------------
# Fused encoder kernel: conv1+BN+ReLU -> conv2+BN+ReLU -> conv3+BN+ReLU -> FC
# ---------------------------------------------------------------------------
def _encoder_kernel(p1_ref, w1_ref, bn1_ref,
                    gm2_ref, w2_ref, bn2_ref,
                    gm3_ref, w3_ref, bn3_ref,
                    gmf_ref, wf_ref, bfc_ref,
                    out_ref):
    f32 = jnp.float32
    bf16 = jnp.bfloat16

    def bn_relu(acc, bn_ref):
        # BatchNorm2d, training-mode batch statistics (biased variance), fused
        # to one scale/shift pass + ReLU.  Conv bias is omitted upstream: a
        # per-channel constant is exactly cancelled by the mean subtraction.
        inv_m = 1.0 / acc.shape[0]
        mean = jnp.sum(acc, axis=0, keepdims=True) * inv_m
        var = jnp.maximum(
            jnp.sum(acc * acc, axis=0, keepdims=True) * inv_m - mean * mean, 0.0)
        scale = bn_ref[0:1, :] * jax.lax.rsqrt(var + BN_EPS)     # gamma row
        shift = bn_ref[1:2, :] - mean * scale                    # beta row
        return jnp.maximum(acc * scale + shift, 0.0).astype(bf16)

    def conv_taps(patches, w_ref):
        # patches: (T*M, 128) bf16, tap-major row blocks; w_ref: (T, 128, 128)
        taps = w_ref.shape[0]
        m = patches.shape[0] // taps
        acc = jnp.dot(patches[0:m, :], w_ref[0], preferred_element_type=f32)
        for t in range(1, taps):
            acc = acc + jnp.dot(patches[t * m:(t + 1) * m, :], w_ref[t],
                                preferred_element_type=f32)
        return acc                                   # (M, 128) f32

    def gather(g_ref, y):
        # Constant 0/1 matrix: exact (lossless) row gather of bf16 activations.
        return jnp.dot(g_ref[...], y, preferred_element_type=f32).astype(bf16)

    # --- conv1 (patches pre-gathered at trace time; K and Cout padded) -------
    acc1 = jnp.dot(p1_ref[...], w1_ref[...], preferred_element_type=f32)
    y1 = bn_relu(acc1, bn1_ref)                                  # (M1, 128)

    # --- conv2: in-kernel stride-2 patch gather + per-tap GEMMs --------------
    y2 = bn_relu(conv_taps(gather(gm2_ref, y1), w2_ref), bn2_ref)  # (M2, 128)

    # --- conv3 ----------------------------------------------------------------
    y3 = bn_relu(conv_taps(gather(gm3_ref, y2), w3_ref), bn3_ref)  # (M3, 128)

    # --- Flatten(NCHW order) + Linear, folded into per-position weights ------
    pf = gather(gmf_ref, y3)            # (S*_FC_BLK, 128); rows s*blk+n = y3[n, s]
    s_pos = wf_ref.shape[0]
    blk = gmf_ref.shape[0] // s_pos
    acc = jnp.dot(pf[0:blk, :], wf_ref[0], preferred_element_type=f32)
    for s in range(1, s_pos):
        acc = acc + jnp.dot(pf[s * blk:(s + 1) * blk, :], wf_ref[s],
                            preferred_element_type=f32)
    n_out = out_ref.shape[0]
    out_ref[...] = acc[:n_out, :] + bfc_ref[...]


# ---------------------------------------------------------------------------
# Trace-time glue (tiny, runs on the 16 KiB raw input only)
# ---------------------------------------------------------------------------
def _im2col(x_nhwc, k, stride, pad):
    # (N,H,W,C) -> (N*OH*OW, k*k*C); column order (kh, kw, c) matches the
    # OIHW weight reshape in prepare_params.
    n, h, w, c = x_nhwc.shape
    oh = _conv_out(h, k, stride, pad)
    ow = _conv_out(w, k, stride, pad)
    xp = jnp.pad(x_nhwc, ((0, 0), (pad, pad), (pad, pad), (0, 0)))
    cols = []
    for kh in range(k):
        for kw in range(k):
            cols.append(xp[:, kh:kh + (oh - 1) * stride + 1:stride,
                              kw:kw + (ow - 1) * stride + 1:stride, :])
    p = jnp.stack(cols, axis=3)                     # (N, OH, OW, k*k, C)
    return p.reshape(n * oh * ow, k * k * c)


def ae_encoder_forward(x_nchw, kp):
    n = x_nchw.shape[0]
    latent = kp["bf"].shape[1]
    x = jnp.transpose(x_nchw, (0, 2, 3, 1))          # NCHW -> NHWC
    p1 = _im2col(x, 4, 2, 1)                         # (M1, 4*4*C_in)
    p1 = jnp.pad(p1, ((0, 0), (0, CPAD - p1.shape[1]))).astype(jnp.bfloat16)
    return pl.pallas_call(
        _encoder_kernel,
        out_shape=jax.ShapeDtypeStruct((n, latent), jnp.float32),
        in_specs=[_VMEM] * 12,
        out_specs=_VMEM,
    )(p1, kp["w1"], kp["bn1"],
      kp["gm2"], kp["w2"], kp["bn2"],
      kp["gm3"], kp["w3"], kp["bn3"],
      kp["gmf"], kp["wf"], kp["bf"])


# ---------------------------------------------------------------------------
# One-time parameter reorganization (trace-time weight reorder; free per call)
# ---------------------------------------------------------------------------
def _build_gather_matrix(n, ih, iw, k, stride, pad):
    """0/1 matrix gathering conv patches (tap-major row blocks) from the
    previous layer's (n*ih*iw, C) activation rows; zero rows = zero padding."""
    oh = _conv_out(ih, k, stride, pad)
    ow = _conv_out(iw, k, stride, pad)
    m_in, m_out = n * ih * iw, n * oh * ow
    g = np.zeros((k * k * m_out, m_in), np.float32)
    for kh in range(k):
        for kw in range(k):
            t = kh * k + kw
            for b in range(n):
                for y in range(oh):
                    sy = stride * y + kh - pad
                    if not 0 <= sy < ih:
                        continue
                    for x in range(ow):
                        sx = stride * x + kw - pad
                        if not 0 <= sx < iw:
                            continue
                        g[t * m_out + (b * oh + y) * ow + x,
                          (b * ih + sy) * iw + sx] = 1.0
    return g


def _build_fc_perm(n, s):
    # Reorders y3 rows (b*S + s) into spatial-major, 8-row-aligned blocks:
    # row s*_FC_BLK + b  <-  y3 row b*S + s   (rows b >= n stay zero).
    assert n <= _FC_BLK
    g = np.zeros((s * _FC_BLK, n * s), np.float32)
    for si in range(s):
        for b in range(n):
            g[si * _FC_BLK + b, b * s + si] = 1.0
    return g


def prepare_params(params, *, batch, spatial):
    def pad_to(a, shape):
        return jnp.pad(a, [(0, t - s) for s, t in zip(a.shape, shape)])

    def prep_bn(gamma, beta):
        g = jnp.ones((CPAD,), jnp.float32).at[:gamma.shape[0]].set(gamma)
        b = jnp.zeros((CPAD,), jnp.float32).at[:beta.shape[0]].set(beta)
        return jnp.stack([g, b], axis=0)             # (2, 128): gamma, beta

    def prep_conv_taps(w):                           # torch OIHW -> (T,128,128)
        cout, cin, kh, kw = w.shape
        wt = jnp.transpose(w, (2, 3, 1, 0)).reshape(kh * kw, cin, cout)
        return pad_to(wt, (kh * kw, CPAD, CPAD)).astype(jnp.bfloat16)

    w1, _b1, gamma1, beta1 = params["conv1"]     # conv biases unused: BN's mean
    w2, _b2, gamma2, beta2 = params["conv2"]     # subtraction cancels them.
    w3, _b3, gamma3, beta3 = params["conv3"]
    wfc, bfc = params["fc"]

    # conv1 weight as one (K1, Cout) matrix, K/Cout zero-padded to 128.
    cout1, cin1, k1, _ = w1.shape
    assert k1 * k1 * cin1 <= CPAD
    w1_mat = jnp.transpose(w1, (2, 3, 1, 0)).reshape(k1 * k1 * cin1, cout1)
    w1_mat = pad_to(w1_mat, (CPAD, CPAD)).astype(jnp.bfloat16)

    h1 = _conv_out(spatial, 4, 2, 1)                 # 8
    h2 = _conv_out(h1, 4, 2, 1)                      # 4
    h3 = _conv_out(h2, 3, 2, 1)                      # 2
    s_pos = h3 * h3

    gm2 = _build_gather_matrix(batch, h1, h1, 4, 2, 1)
    gm3 = _build_gather_matrix(batch, h2, h2, 3, 2, 1)
    gmf = _build_fc_perm(batch, s_pos)

    # Flatten(NCHW) + Linear folded into per-spatial-position weight slices:
    # out[n,l] = sum_{s,c} y3[n*S+s, c] * wfc[l, c*S + s]   (c < conv3_out)
    latent = wfc.shape[0]
    c3 = w3.shape[0]
    assert wfc.shape[1] == c3 * s_pos
    wf_r = wfc.reshape(latent, c3, h3, h3)           # (L, c, h, w)
    wf_s = jnp.transpose(wf_r, (2, 3, 1, 0)).reshape(s_pos, c3, latent)
    wf_s = pad_to(wf_s, (s_pos, CPAD, latent)).astype(jnp.bfloat16)

    return {
        "w1": w1_mat, "bn1": prep_bn(gamma1, beta1),
        "gm2": jnp.asarray(gm2, jnp.bfloat16), "w2": prep_conv_taps(w2),
        "bn2": prep_bn(gamma2, beta2),
        "gm3": jnp.asarray(gm3, jnp.bfloat16), "w3": prep_conv_taps(w3),
        "bn3": prep_bn(gamma3, beta3),
        "gmf": jnp.asarray(gmf, jnp.bfloat16), "wf": wf_s,
        "bf": bfc.reshape(1, latent).astype(jnp.float32),
    }


# ---------------------------------------------------------------------------
# Deterministic parameter initialization (synthetic, PyTorch layouts)
# ---------------------------------------------------------------------------
def init_params(key, num_channels, encoder_output_size, latent_dim):
    k = jax.random.split(key, 8)

    def conv_params(k1, k2, cin, cout, ks):
        w = jax.random.normal(k1, (cout, cin, ks, ks), jnp.float32) * 0.1
        b = jax.random.normal(k2, (cout,), jnp.float32) * 0.1   # unused (BN cancels)
        gamma = jnp.ones((cout,), jnp.float32)
        beta = jnp.zeros((cout,), jnp.float32)
        return (w, b, gamma, beta)

    return {
        "conv1": conv_params(k[0], k[1], num_channels, 32, 4),
        "conv2": conv_params(k[2], k[3], 32, 32, 4),
        "conv3": conv_params(k[4], k[5], 32, 64, 3),
        "fc": (
            jax.random.normal(k[6], (latent_dim, encoder_output_size),
                              jnp.float32) * 0.05,
            jax.random.normal(k[7], (latent_dim,), jnp.float32) * 0.05,
        ),
    }


# ---------------------------------------------------------------------------
if __name__ == "__main__":
    key = jax.random.PRNGKey(0)
    kx, kparam = jax.random.split(key)

    # hparams: num_channels=4, latent_dim=32; 16x16 input.
    # conv spatial: 16 -> 8 -> 4 -> 2, conv3 channels 64 => encoder_output_size = 256
    N, C, H, W = 2, 4, 16, 16
    latent_dim = 32
    encoder_output_size = 64 * 2 * 2

    x = jax.random.normal(kx, (N, C, H, W), jnp.float32)
    params = init_params(kparam, C, encoder_output_size, latent_dim)
    kparams = prepare_params(params, batch=N, spatial=H)

    fwd = jax.jit(ae_encoder_forward)
    out = jax.block_until_ready(fwd(x, kparams))
    assert out.shape == (N, latent_dim), out.shape
    assert out.dtype == jnp.float32
    assert bool(jnp.all(jnp.isfinite(out)))
    print("KERNEL_OK")
</pallas_src>

<mosaic_0001>
module attributes {stable_mosaic.version = 11 : i64} {
  func.func @_encoder_kernel(%arg0: memref<128x128xbf16, #tpu.memory_space<vmem>>, %arg1: memref<128x128xbf16, #tpu.memory_space<vmem>>, %arg2: memref<2x128xf32, #tpu.memory_space<vmem>>, %arg3: memref<512x128xbf16, #tpu.memory_space<vmem>>, %arg4: memref<16x128x128xbf16, #tpu.memory_space<vmem>>, %arg5: memref<2x128xf32, #tpu.memory_space<vmem>>, %arg6: memref<72x32xbf16, #tpu.memory_space<vmem>>, %arg7: memref<9x128x128xbf16, #tpu.memory_space<vmem>>, %arg8: memref<2x128xf32, #tpu.memory_space<vmem>>, %arg9: memref<32x8xbf16, #tpu.memory_space<vmem>>, %arg10: memref<4x128x32xbf16, #tpu.memory_space<vmem>>, %arg11: memref<1x32xf32, #tpu.memory_space<vmem>>, %arg12: memref<2x32xf32, #tpu.memory_space<vmem>>) attributes {dimension_semantics = [], scalar_prefetch = 0 : i64, scratch_operands = 0 : i64, tpu.core_type = #tpu.core_type<tc>} {
    %c0 = arith.constant 0 : index
    %c0_0 = arith.constant 0 : index
    %0 = vector.load %arg0[%c0, %c0_0] : memref<128x128xbf16, #tpu.memory_space<vmem>>, vector<128x128xbf16>
    %c0_1 = arith.constant 0 : index
    %c0_2 = arith.constant 0 : index
    %1 = vector.load %arg1[%c0_1, %c0_2] : memref<128x128xbf16, #tpu.memory_space<vmem>>, vector<128x128xbf16>
    %cst = arith.constant dense<0.000000e+00> : vector<128x128xf32>
    %2 = tpu.matmul %0, %1, %cst {dimension_numbers = #tpu.dot_dimension_numbers<[1], [0], [0], [1], [0, 0, 1, 1], [], []>} : vector<128x128xbf16>, vector<128x128xbf16>, vector<128x128xf32> -> vector<128x128xf32>
    %cst_3 = arith.constant dense<0.000000e+00> : vector<128xf32>
    %3 = vector.multi_reduction <add>, %2, %cst_3 [0] : vector<128x128xf32> to vector<128xf32>
    %4 = vector.shape_cast %3 : vector<128xf32> to vector<1x128xf32>
    %cst_4 = arith.constant 7.812500e-03 : f32
    %5 = vector.broadcast %cst_4 : f32 to vector<1x128xf32>
    %6 = arith.mulf %4, %5 : vector<1x128xf32>
    %7 = arith.mulf %2, %2 : vector<128x128xf32>
    %cst_5 = arith.constant dense<0.000000e+00> : vector<128xf32>
    %8 = vector.multi_reduction <add>, %7, %cst_5 [0] : vector<128x128xf32> to vector<128xf32>
    %9 = vector.shape_cast %8 : vector<128xf32> to vector<1x128xf32>
    %cst_6 = arith.constant 7.812500e-03 : f32
    %10 = vector.broadcast %cst_6 : f32 to vector<1x128xf32>
    %11 = arith.mulf %9, %10 : vector<1x128xf32>
    %12 = arith.mulf %6, %6 : vector<1x128xf32>
    %13 = arith.subf %11, %12 : vector<1x128xf32>
    %cst_7 = arith.constant 0.000000e+00 : f32
    %14 = vector.broadcast %cst_7 : f32 to vector<1x128xf32>
    %15 = arith.maximumf %13, %14 : vector<1x128xf32>
    %c0_8 = arith.constant 0 : index
    %c0_9 = arith.constant 0 : index
    %16 = vector.load %arg2[%c0_8, %c0_9] : memref<2x128xf32, #tpu.memory_space<vmem>>, vector<1x128xf32>
    %cst_10 = arith.constant 9.99999974E-6 : f32
    %17 = vector.broadcast %cst_10 : f32 to vector<1x128xf32>
    %18 = arith.addf %15, %17 : vector<1x128xf32>
    %19 = math.rsqrt %18 : vector<1x128xf32>
    %20 = arith.mulf %16, %19 : vector<1x128xf32>
    %c1 = arith.constant 1 : index
    %c0_11 = arith.constant 0 : index
    %21 = vector.load %arg2[%c1, %c0_11] : memref<2x128xf32, #tpu.memory_space<vmem>>, vector<1x128xf32>
    %22 = arith.mulf %6, %20 : vector<1x128xf32>
    %23 = arith.subf %21, %22 : vector<1x128xf32>
    %24 = vector.broadcast %20 : vector<1x128xf32> to vector<128x128xf32>
    %25 = arith.mulf %2, %24 : vector<128x128xf32>
    %26 = vector.broadcast %23 : vector<1x128xf32> to vector<128x128xf32>
    %27 = arith.addf %25, %26 : vector<128x128xf32>
    %cst_12 = arith.constant 0.000000e+00 : f32
    %28 = vector.broadcast %cst_12 : f32 to vector<128x128xf32>
    %29 = arith.maximumf %27, %28 : vector<128x128xf32>
    %30 = arith.truncf %29 : vector<128x128xf32> to vector<128x128xbf16>
    %c0_13 = arith.constant 0 : index
    %c0_14 = arith.constant 0 : index
    %31 = vector.load %arg3[%c0_13, %c0_14] : memref<512x128xbf16, #tpu.memory_space<vmem>>, vector<512x128xbf16>
    %cst_15 = arith.constant dense<0.000000e+00> : vector<512x128xf32>
    %32 = tpu.matmul %31, %30, %cst_15 {dimension_numbers = #tpu.dot_dimension_numbers<[1], [0], [0], [1], [0, 0, 1, 1], [], []>} : vector<512x128xbf16>, vector<128x128xbf16>, vector<512x128xf32> -> vector<512x128xf32>
    %33 = arith.truncf %32 : vector<512x128xf32> to vector<512x128xbf16>
    %34 = vector.extract_strided_slice %33 {offsets = [0, 0], sizes = [32, 128], strides = [1, 1]} : vector<512x128xbf16> to vector<32x128xbf16>
    %c0_16 = arith.constant 0 : index
    %c0_17 = arith.constant 0 : index
    %c0_18 = arith.constant 0 : index
    %35 = vector.load %arg4[%c0_16, %c0_17, %c0_18] : memref<16x128x128xbf16, #tpu.memory_space<vmem>>, vector<1x128x128xbf16>
    %36 = vector.shape_cast %35 : vector<1x128x128xbf16> to vector<128x128xbf16>
    %cst_19 = arith.constant dense<0.000000e+00> : vector<32x128xf32>
    %37 = tpu.matmul %34, %36, %cst_19 {dimension_numbers = #tpu.dot_dimension_numbers<[1], [0], [0], [1], [0, 0, 1, 1], [], []>} : vector<32x128xbf16>, vector<128x128xbf16>, vector<32x128xf32> -> vector<32x128xf32>
    %38 = vector.extract_strided_slice %33 {offsets = [32, 0], sizes = [32, 128], strides = [1, 1]} : vector<512x128xbf16> to vector<32x128xbf16>
    %c1_20 = arith.constant 1 : index
    %c0_21 = arith.constant 0 : index
    %c0_22 = arith.constant 0 : index
    %39 = vector.load %arg4[%c1_20, %c0_21, %c0_22] : memref<16x128x128xbf16, #tpu.memory_space<vmem>>, vector<1x128x128xbf16>
    %40 = vector.shape_cast %39 : vector<1x128x128xbf16> to vector<128x128xbf16>
    %cst_23 = arith.constant dense<0.000000e+00> : vector<32x128xf32>
    %41 = tpu.matmul %38, %40, %cst_23 {dimension_numbers = #tpu.dot_dimension_numbers<[1], [0], [0], [1], [0, 0, 1, 1], [], []>} : vector<32x128xbf16>, vector<128x128xbf16>, vector<32x128xf32> -> vector<32x128xf32>
    %42 = arith.addf %37, %41 : vector<32x128xf32>
    %43 = vector.extract_strided_slice %33 {offsets = [64, 0], sizes = [32, 128], strides = [1, 1]} : vector<512x128xbf16> to vector<32x128xbf16>
    %c2 = arith.constant 2 : index
    %c0_24 = arith.constant 0 : index
    %c0_25 = arith.constant 0 : index
    %44 = vector.load %arg4[%c2, %c0_24, %c0_25] : memref<16x128x128xbf16, #tpu.memory_space<vmem>>, vector<1x128x128xbf16>
    %45 = vector.shape_cast %44 : vector<1x128x128xbf16> to vector<128x128xbf16>
    %cst_26 = arith.constant dense<0.000000e+00> : vector<32x128xf32>
    %46 = tpu.matmul %43, %45, %cst_26 {dimension_numbers = #tpu.dot_dimension_numbers<[1], [0], [0], [1], [0, 0, 1, 1], [], []>} : vector<32x128xbf16>, vector<128x128xbf16>, vector<32x128xf32> -> vector<32x128xf32>
    %47 = arith.addf %42, %46 : vector<32x128xf32>
    %48 = vector.extract_strided_slice %33 {offsets = [96, 0], sizes = [32, 128], strides = [1, 1]} : vector<512x128xbf16> to vector<32x128xbf16>
    %c3 = arith.constant 3 : index
    %c0_27 = arith.constant 0 : index
    %c0_28 = arith.constant 0 : index
    %49 = vector.load %arg4[%c3, %c0_27, %c0_28] : memref<16x128x128xbf16, #tpu.memory_space<vmem>>, vector<1x128x128xbf16>
    %50 = vector.shape_cast %49 : vector<1x128x128xbf16> to vector<128x128xbf16>
    %cst_29 = arith.constant dense<0.000000e+00> : vector<32x128xf32>
    %51 = tpu.matmul %48, %50, %cst_29 {dimension_numbers = #tpu.dot_dimension_numbers<[1], [0], [0], [1], [0, 0, 1, 1], [], []>} : vector<32x128xbf16>, vector<128x128xbf16>, vector<32x128xf32> -> vector<32x128xf32>
    %52 = arith.addf %47, %51 : vector<32x128xf32>
    %53 = vector.extract_strided_slice %33 {offsets = [128, 0], sizes = [32, 128], strides = [1, 1]} : vector<512x128xbf16> to vector<32x128xbf16>
    %c4 = arith.constant 4 : index
    %c0_30 = arith.constant 0 : index
    %c0_31 = arith.constant 0 : index
    %54 = vector.load %arg4[%c4, %c0_30, %c0_31] : memref<16x128x128xbf16, #tpu.memory_space<vmem>>, vector<1x128x128xbf16>
    %55 = vector.shape_cast %54 : vector<1x128x128xbf16> to vector<128x128xbf16>
    %cst_32 = arith.constant dense<0.000000e+00> : vector<32x128xf32>
    %56 = tpu.matmul %53, %55, %cst_32 {dimension_numbers = #tpu.dot_dimension_numbers<[1], [0], [0], [1], [0, 0, 1, 1], [], []>} : vector<32x128xbf16>, vector<128x128xbf16>, vector<32x128xf32> -> vector<32x128xf32>
    %57 = arith.addf %52, %56 : vector<32x128xf32>
    %58 = vector.extract_strided_slice %33 {offsets = [160, 0], sizes = [32, 128], strides = [1, 1]} : vector<512x128xbf16> to vector<32x128xbf16>
    %c5 = arith.constant 5 : index
    %c0_33 = arith.constant 0 : index
    %c0_34 = arith.constant 0 : index
    %59 = vector.load %arg4[%c5, %c0_33, %c0_34] : memref<16x128x128xbf16, #tpu.memory_space<vmem>>, vector<1x128x128xbf16>
    %60 = vector.shape_cast %59 : vector<1x128x128xbf16> to vector<128x128xbf16>
    %cst_35 = arith.constant dense<0.000000e+00> : vector<32x128xf32>
    %61 = tpu.matmul %58, %60, %cst_35 {dimension_numbers = #tpu.dot_dimension_numbers<[1], [0], [0], [1], [0, 0, 1, 1], [], []>} : vector<32x128xbf16>, vector<128x128xbf16>, vector<32x128xf32> -> vector<32x128xf32>
    %62 = arith.addf %57, %61 : vector<32x128xf32>
    %63 = vector.extract_strided_slice %33 {offsets = [192, 0], sizes = [32, 128], strides = [1, 1]} : vector<512x128xbf16> to vector<32x128xbf16>
    %c6 = arith.constant 6 : index
    %c0_36 = arith.constant 0 : index
    %c0_37 = arith.constant 0 : index
    %64 = vector.load %arg4[%c6, %c0_36, %c0_37] : memref<16x128x128xbf16, #tpu.memory_space<vmem>>, vector<1x128x128xbf16>
    %65 = vector.shape_cast %64 : vector<1x128x128xbf16> to vector<128x128xbf16>
    %cst_38 = arith.constant dense<0.000000e+00> : vector<32x128xf32>
    %66 = tpu.matmul %63, %65, %cst_38 {dimension_numbers = #tpu.dot_dimension_numbers<[1], [0], [0], [1], [0, 0, 1, 1], [], []>} : vector<32x128xbf16>, vector<128x128xbf16>, vector<32x128xf32> -> vector<32x128xf32>
    %67 = arith.addf %62, %66 : vector<32x128xf32>
    %68 = vector.extract_strided_slice %33 {offsets = [224, 0], sizes = [32, 128], strides = [1, 1]} : vector<512x128xbf16> to vector<32x128xbf16>
    %c7 = arith.constant 7 : index
    %c0_39 = arith.constant 0 : index
    %c0_40 = arith.constant 0 : index
    %69 = vector.load %arg4[%c7, %c0_39, %c0_40] : memref<16x128x128xbf16, #tpu.memory_space<vmem>>, vector<1x128x128xbf16>
    %70 = vector.shape_cast %69 : vector<1x128x128xbf16> to vector<128x128xbf16>
    %cst_41 = arith.constant dense<0.000000e+00> : vector<32x128xf32>
    %71 = tpu.matmul %68, %70, %cst_41 {dimension_numbers = #tpu.dot_dimension_numbers<[1], [0], [0], [1], [0, 0, 1, 1], [], []>} : vector<32x128xbf16>, vector<128x128xbf16>, vector<32x128xf32> -> vector<32x128xf32>
    %72 = arith.addf %67, %71 : vector<32x128xf32>
    %73 = vector.extract_strided_slice %33 {offsets = [256, 0], sizes = [32, 128], strides = [1, 1]} : vector<512x128xbf16> to vector<32x128xbf16>
    %c8 = arith.constant 8 : index
    %c0_42 = arith.constant 0 : index
    %c0_43 = arith.constant 0 : index
    %74 = vector.load %arg4[%c8, %c0_42, %c0_43] : memref<16x128x128xbf16, #tpu.memory_space<vmem>>, vector<1x128x128xbf16>
    %75 = vector.shape_cast %74 : vector<1x128x128xbf16> to vector<128x128xbf16>
    %cst_44 = arith.constant dense<0.000000e+00> : vector<32x128xf32>
    %76 = tpu.matmul %73, %75, %cst_44 {dimension_numbers = #tpu.dot_dimension_numbers<[1], [0], [0], [1], [0, 0, 1, 1], [], []>} : vector<32x128xbf16>, vector<128x128xbf16>, vector<32x128xf32> -> vector<32x128xf32>
    %77 = arith.addf %72, %76 : vector<32x128xf32>
    %78 = vector.extract_strided_slice %33 {offsets = [288, 0], sizes = [32, 128], strides = [1, 1]} : vector<512x128xbf16> to vector<32x128xbf16>
    %c9 = arith.constant 9 : index
    %c0_45 = arith.constant 0 : index
    %c0_46 = arith.constant 0 : index
    %79 = vector.load %arg4[%c9, %c0_45, %c0_46] : memref<16x128x128xbf16, #tpu.memory_space<vmem>>, vector<1x128x128xbf16>
    %80 = vector.shape_cast %79 : vector<1x128x128xbf16> to vector<128x128xbf16>
    %cst_47 = arith.constant dense<0.000000e+00> : vector<32x128xf32>
    %81 = tpu.matmul %78, %80, %cst_47 {dimension_numbers = #tpu.dot_dimension_numbers<[1], [0], [0], [1], [0, 0, 1, 1], [], []>} : vector<32x128xbf16>, vector<128x128xbf16>, vector<32x128xf32> -> vector<32x128xf32>
    %82 = arith.addf %77, %81 : vector<32x128xf32>
    %83 = vector.extract_strided_slice %33 {offsets = [320, 0], sizes = [32, 128], strides = [1, 1]} : vector<512x128xbf16> to vector<32x128xbf16>
    %c10 = arith.constant 10 : index
    %c0_48 = arith.constant 0 : index
    %c0_49 = arith.constant 0 : index
    %84 = vector.load %arg4[%c10, %c0_48, %c0_49] : memref<16x128x128xbf16, #tpu.memory_space<vmem>>, vector<1x128x128xbf16>
    %85 = vector.shape_cast %84 : vector<1x128x128xbf16> to vector<128x128xbf16>
    %cst_50 = arith.constant dense<0.000000e+00> : vector<32x128xf32>
    %86 = tpu.matmul %83, %85, %cst_50 {dimension_numbers = #tpu.dot_dimension_numbers<[1], [0], [0], [1], [0, 0, 1, 1], [], []>} : vector<32x128xbf16>, vector<128x128xbf16>, vector<32x128xf32> -> vector<32x128xf32>
    %87 = arith.addf %82, %86 : vector<32x128xf32>
    %88 = vector.extract_strided_slice %33 {offsets = [352, 0], sizes = [32, 128], strides = [1, 1]} : vector<512x128xbf16> to vector<32x128xbf16>
    %c11 = arith.constant 11 : index
    %c0_51 = arith.constant 0 : index
    %c0_52 = arith.constant 0 : index
    %89 = vector.load %arg4[%c11, %c0_51, %c0_52] : memref<16x128x128xbf16, #tpu.memory_space<vmem>>, vector<1x128x128xbf16>
    %90 = vector.shape_cast %89 : vector<1x128x128xbf16> to vector<128x128xbf16>
    %cst_53 = arith.constant dense<0.000000e+00> : vector<32x128xf32>
    %91 = tpu.matmul %88, %90, %cst_53 {dimension_numbers = #tpu.dot_dimension_numbers<[1], [0], [0], [1], [0, 0, 1, 1], [], []>} : vector<32x128xbf16>, vector<128x128xbf16>, vector<32x128xf32> -> vector<32x128xf32>
    %92 = arith.addf %87, %91 : vector<32x128xf32>
    %93 = vector.extract_strided_slice %33 {offsets = [384, 0], sizes = [32, 128], strides = [1, 1]} : vector<512x128xbf16> to vector<32x128xbf16>
    %c12 = arith.constant 12 : index
    %c0_54 = arith.constant 0 : index
    %c0_55 = arith.constant 0 : index
    %94 = vector.load %arg4[%c12, %c0_54, %c0_55] : memref<16x128x128xbf16, #tpu.memory_space<vmem>>, vector<1x128x128xbf16>
    %95 = vector.shape_cast %94 : vector<1x128x128xbf16> to vector<128x128xbf16>
    %cst_56 = arith.constant dense<0.000000e+00> : vector<32x128xf32>
    %96 = tpu.matmul %93, %95, %cst_56 {dimension_numbers = #tpu.dot_dimension_numbers<[1], [0], [0], [1], [0, 0, 1, 1], [], []>} : vector<32x128xbf16>, vector<128x128xbf16>, vector<32x128xf32> -> vector<32x128xf32>
    %97 = arith.addf %92, %96 : vector<32x128xf32>
    %98 = vector.extract_strided_slice %33 {offsets = [416, 0], sizes = [32, 128], strides = [1, 1]} : vector<512x128xbf16> to vector<32x128xbf16>
    %c13 = arith.constant 13 : index
    %c0_57 = arith.constant 0 : index
    %c0_58 = arith.constant 0 : index
    %99 = vector.load %arg4[%c13, %c0_57, %c0_58] : memref<16x128x128xbf16, #tpu.memory_space<vmem>>, vector<1x128x128xbf16>
    %100 = vector.shape_cast %99 : vector<1x128x128xbf16> to vector<128x128xbf16>
    %cst_59 = arith.constant dense<0.000000e+00> : vector<32x128xf32>
    %101 = tpu.matmul %98, %100, %cst_59 {dimension_numbers = #tpu.dot_dimension_numbers<[1], [0], [0], [1], [0, 0, 1, 1], [], []>} : vector<32x128xbf16>, vector<128x128xbf16>, vector<32x128xf32> -> vector<32x128xf32>
    %102 = arith.addf %97, %101 : vector<32x128xf32>
    %103 = vector.extract_strided_slice %33 {offsets = [448, 0], sizes = [32, 128], strides = [1, 1]} : vector<512x128xbf16> to vector<32x128xbf16>
    %c14 = arith.constant 14 : index
    %c0_60 = arith.constant 0 : index
    %c0_61 = arith.constant 0 : index
    %104 = vector.load %arg4[%c14, %c0_60, %c0_61] : memref<16x128x128xbf16, #tpu.memory_space<vmem>>, vector<1x128x128xbf16>
    %105 = vector.shape_cast %104 : vector<1x128x128xbf16> to vector<128x128xbf16>
    %cst_62 = arith.constant dense<0.000000e+00> : vector<32x128xf32>
    %106 = tpu.matmul %103, %105, %cst_62 {dimension_numbers = #tpu.dot_dimension_numbers<[1], [0], [0], [1], [0, 0, 1, 1], [], []>} : vector<32x128xbf16>, vector<128x128xbf16>, vector<32x128xf32> -> vector<32x128xf32>
    %107 = arith.addf %102, %106 : vector<32x128xf32>
    %108 = vector.extract_strided_slice %33 {offsets = [480, 0], sizes = [32, 128], strides = [1, 1]} : vector<512x128xbf16> to vector<32x128xbf16>
    %c15 = arith.constant 15 : index
    %c0_63 = arith.constant 0 : index
    %c0_64 = arith.constant 0 : index
    %109 = vector.load %arg4[%c15, %c0_63, %c0_64] : memref<16x128x128xbf16, #tpu.memory_space<vmem>>, vector<1x128x128xbf16>
    %110 = vector.shape_cast %109 : vector<1x128x128xbf16> to vector<128x128xbf16>
    %cst_65 = arith.constant dense<0.000000e+00> : vector<32x128xf32>
    %111 = tpu.matmul %108, %110, %cst_65 {dimension_numbers = #tpu.dot_dimension_numbers<[1], [0], [0], [1], [0, 0, 1, 1], [], []>} : vector<32x128xbf16>, vector<128x128xbf16>, vector<32x128xf32> -> vector<32x128xf32>
    %112 = arith.addf %107, %111 : vector<32x128xf32>
    %cst_66 = arith.constant dense<0.000000e+00> : vector<128xf32>
    %113 = vector.multi_reduction <add>, %112, %cst_66 [0] : vector<32x128xf32> to vector<128xf32>
    %114 = vector.shape_cast %113 : vector<128xf32> to vector<1x128xf32>
    %cst_67 = arith.constant 3.125000e-02 : f32
    %115 = vector.broadcast %cst_67 : f32 to vector<1x128xf32>
    %116 = arith.mulf %114, %115 : vector<1x128xf32>
    %117 = arith.mulf %112, %112 : vector<32x128xf32>
    %cst_68 = arith.constant dense<0.000000e+00> : vector<128xf32>
    %118 = vector.multi_reduction <add>, %117, %cst_68 [0] : vector<32x128xf32> to vector<128xf32>
    %119 = vector.shape_cast %118 : vector<128xf32> to vector<1x128xf32>
    %cst_69 = arith.constant 3.125000e-02 : f32
    %120 = vector.broadcast %cst_69 : f32 to vector<1x128xf32>
    %121 = arith.mulf %119, %120 : vector<1x128xf32>
    %122 = arith.mulf %116, %116 : vector<1x128xf32>
    %123 = arith.subf %121, %122 : vector<1x128xf32>
    %cst_70 = arith.constant 0.000000e+00 : f32
    %124 = vector.broadcast %cst_70 : f32 to vector<1x128xf32>
    %125 = arith.maximumf %123, %124 : vector<1x128xf32>
    %c0_71 = arith.constant 0 : index
    %c0_72 = arith.constant 0 : index
    %126 = vector.load %arg5[%c0_71, %c0_72] : memref<2x128xf32, #tpu.memory_space<vmem>>, vector<1x128xf32>
    %cst_73 = arith.constant 9.99999974E-6 : f32
    %127 = vector.broadcast %cst_73 : f32 to vector<1x128xf32>
    %128 = arith.addf %125, %127 : vector<1x128xf32>
    %129 = math.rsqrt %128 : vector<1x128xf32>
    %130 = arith.mulf %126, %129 : vector<1x128xf32>
    %c1_74 = arith.constant 1 : index
    %c0_75 = arith.constant 0 : index
    %131 = vector.load %arg5[%c1_74, %c0_75] : memref<2x128xf32, #tpu.memory_space<vmem>>, vector<1x128xf32>
    %132 = arith.mulf %116, %130 : vector<1x128xf32>
    %133 = arith.subf %131, %132 : vector<1x128xf32>
    %134 = vector.broadcast %130 : vector<1x128xf32> to vector<32x128xf32>
    %135 = arith.mulf %112, %134 : vector<32x128xf32>
    %136 = vector.broadcast %133 : vector<1x128xf32> to vector<32x128xf32>
    %137 = arith.addf %135, %136 : vector<32x128xf32>
    %cst_76 = arith.constant 0.000000e+00 : f32
    %138 = vector.broadcast %cst_76 : f32 to vector<32x128xf32>
    %139 = arith.maximumf %137, %138 : vector<32x128xf32>
    %140 = arith.truncf %139 : vector<32x128xf32> to vector<32x128xbf16>
    %c0_77 = arith.constant 0 : index
    %c0_78 = arith.constant 0 : index
    %141 = vector.load %arg6[%c0_77, %c0_78] : memref<72x32xbf16, #tpu.memory_space<vmem>>, vector<72x32xbf16>
    %cst_79 = arith.constant dense<0.000000e+00> : vector<72x128xf32>
    %142 = tpu.matmul %141, %140, %cst_79 {dimension_numbers = #tpu.dot_dimension_numbers<[1], [0], [0], [1], [0, 0, 1, 1], [], []>} : vector<72x32xbf16>, vector<32x128xbf16>, vector<72x128xf32> -> vector<72x128xf32>
    %143 = arith.truncf %142 : vector<72x128xf32> to vector<72x128xbf16>
    %144 = vector.extract_strided_slice %143 {offsets = [0, 0], sizes = [8, 128], strides = [1, 1]} : vector<72x128xbf16> to vector<8x128xbf16>
    %c0_80 = arith.constant 0 : index
    %c0_81 = arith.constant 0 : index
    %c0_82 = arith.constant 0 : index
    %145 = vector.load %arg7[%c0_80, %c0_81, %c0_82] : memref<9x128x128xbf16, #tpu.memory_space<vmem>>, vector<1x128x128xbf16>
    %146 = vector.shape_cast %145 : vector<1x128x128xbf16> to vector<128x128xbf16>
    %cst_83 = arith.constant dense<0.000000e+00> : vector<8x128xf32>
    %147 = tpu.matmul %144, %146, %cst_83 {dimension_numbers = #tpu.dot_dimension_numbers<[1], [0], [0], [1], [0, 0, 1, 1], [], []>} : vector<8x128xbf16>, vector<128x128xbf16>, vector<8x128xf32> -> vector<8x128xf32>
    %148 = vector.extract_strided_slice %143 {offsets = [8, 0], sizes = [8, 128], strides = [1, 1]} : vector<72x128xbf16> to vector<8x128xbf16>
    %c1_84 = arith.constant 1 : index
    %c0_85 = arith.constant 0 : index
    %c0_86 = arith.constant 0 : index
    %149 = vector.load %arg7[%c1_84, %c0_85, %c0_86] : memref<9x128x128xbf16, #tpu.memory_space<vmem>>, vector<1x128x128xbf16>
    %150 = vector.shape_cast %149 : vector<1x128x128xbf16> to vector<128x128xbf16>
    %cst_87 = arith.constant dense<0.000000e+00> : vector<8x128xf32>
    %151 = tpu.matmul %148, %150, %cst_87 {dimension_numbers = #tpu.dot_dimension_numbers<[1], [0], [0], [1], [0, 0, 1, 1], [], []>} : vector<8x128xbf16>, vector<128x128xbf16>, vector<8x128xf32> -> vector<8x128xf32>
    %152 = arith.addf %147, %151 : vector<8x128xf32>
    %153 = vector.extract_strided_slice %143 {offsets = [16, 0], sizes = [8, 128], strides = [1, 1]} : vector<72x128xbf16> to vector<8x128xbf16>
    %c2_88 = arith.constant 2 : index
    %c0_89 = arith.constant 0 : index
    %c0_90 = arith.constant 0 : index
    %154 = vector.load %arg7[%c2_88, %c0_89, %c0_90] : memref<9x128x128xbf16, #tpu.memory_space<vmem>>, vector<1x128x128xbf16>
    %155 = vector.shape_cast %154 : vector<1x128x128xbf16> to vector<128x128xbf16>
    %cst_91 = arith.constant dense<0.000000e+00> : vector<8x128xf32>
    %156 = tpu.matmul %153, %155, %cst_91 {dimension_numbers = #tpu.dot_dimension_numbers<[1], [0], [0], [1], [0, 0, 1, 1], [], []>} : vector<8x128xbf16>, vector<128x128xbf16>, vector<8x128xf32> -> vector<8x128xf32>
    %157 = arith.addf %152, %156 : vector<8x128xf32>
    %158 = vector.extract_strided_slice %143 {offsets = [24, 0], sizes = [8, 128], strides = [1, 1]} : vector<72x128xbf16> to vector<8x128xbf16>
    %c3_92 = arith.constant 3 : index
    %c0_93 = arith.constant 0 : index
    %c0_94 = arith.constant 0 : index
    %159 = vector.load %arg7[%c3_92, %c0_93, %c0_94] : memref<9x128x128xbf16, #tpu.memory_space<vmem>>, vector<1x128x128xbf16>
    %160 = vector.shape_cast %159 : vector<1x128x128xbf16> to vector<128x128xbf16>
    %cst_95 = arith.constant dense<0.000000e+00> : vector<8x128xf32>
    %161 = tpu.matmul %158, %160, %cst_95 {dimension_numbers = #tpu.dot_dimension_numbers<[1], [0], [0], [1], [0, 0, 1, 1], [], []>} : vector<8x128xbf16>, vector<128x128xbf16>, vector<8x128xf32> -> vector<8x128xf32>
    %162 = arith.addf %157, %161 : vector<8x128xf32>
    %163 = vector.extract_strided_slice %143 {offsets = [32, 0], sizes = [8, 128], strides = [1, 1]} : vector<72x128xbf16> to vector<8x128xbf16>
    %c4_96 = arith.constant 4 : index
    %c0_97 = arith.constant 0 : index
    %c0_98 = arith.constant 0 : index
    %164 = vector.load %arg7[%c4_96, %c0_97, %c0_98] : memref<9x128x128xbf16, #tpu.memory_space<vmem>>, vector<1x128x128xbf16>
    %165 = vector.shape_cast %164 : vector<1x128x128xbf16> to vector<128x128xbf16>
    %cst_99 = arith.constant dense<0.000000e+00> : vector<8x128xf32>
    %166 = tpu.matmul %163, %165, %cst_99 {dimension_numbers = #tpu.dot_dimension_numbers<[1], [0], [0], [1], [0, 0, 1, 1], [], []>} : vector<8x128xbf16>, vector<128x128xbf16>, vector<8x128xf32> -> vector<8x128xf32>
    %167 = arith.addf %162, %166 : vector<8x128xf32>
    %168 = vector.extract_strided_slice %143 {offsets = [40, 0], sizes = [8, 128], strides = [1, 1]} : vector<72x128xbf16> to vector<8x128xbf16>
    %c5_100 = arith.constant 5 : index
    %c0_101 = arith.constant 0 : index
    %c0_102 = arith.constant 0 : index
    %169 = vector.load %arg7[%c5_100, %c0_101, %c0_102] : memref<9x128x128xbf16, #tpu.memory_space<vmem>>, vector<1x128x128xbf16>
    %170 = vector.shape_cast %169 : vector<1x128x128xbf16> to vector<128x128xbf16>
    %cst_103 = arith.constant dense<0.000000e+00> : vector<8x128xf32>
    %171 = tpu.matmul %168, %170, %cst_103 {dimension_numbers = #tpu.dot_dimension_numbers<[1], [0], [0], [1], [0, 0, 1, 1], [], []>} : vector<8x128xbf16>, vector<128x128xbf16>, vector<8x128xf32> -> vector<8x128xf32>
    %172 = arith.addf %167, %171 : vector<8x128xf32>
    %173 = vector.extract_strided_slice %143 {offsets = [48, 0], sizes = [8, 128], strides = [1, 1]} : vector<72x128xbf16> to vector<8x128xbf16>
    %c6_104 = arith.constant 6 : index
    %c0_105 = arith.constant 0 : index
    %c0_106 = arith.constant 0 : index
    %174 = vector.load %arg7[%c6_104, %c0_105, %c0_106] : memref<9x128x128xbf16, #tpu.memory_space<vmem>>, vector<1x128x128xbf16>
    %175 = vector.shape_cast %174 : vector<1x128x128xbf16> to vector<128x128xbf16>
    %cst_107 = arith.constant dense<0.000000e+00> : vector<8x128xf32>
    %176 = tpu.matmul %173, %175, %cst_107 {dimension_numbers = #tpu.dot_dimension_numbers<[1], [0], [0], [1], [0, 0, 1, 1], [], []>} : vector<8x128xbf16>, vector<128x128xbf16>, vector<8x128xf32> -> vector<8x128xf32>
    %177 = arith.addf %172, %176 : vector<8x128xf32>
    %178 = vector.extract_strided_slice %143 {offsets = [56, 0], sizes = [8, 128], strides = [1, 1]} : vector<72x128xbf16> to vector<8x128xbf16>
    %c7_108 = arith.constant 7 : index
    %c0_109 = arith.constant 0 : index
    %c0_110 = arith.constant 0 : index
    %179 = vector.load %arg7[%c7_108, %c0_109, %c0_110] : memref<9x128x128xbf16, #tpu.memory_space<vmem>>, vector<1x128x128xbf16>
    %180 = vector.shape_cast %179 : vector<1x128x128xbf16> to vector<128x128xbf16>
    %cst_111 = arith.constant dense<0.000000e+00> : vector<8x128xf32>
    %181 = tpu.matmul %178, %180, %cst_111 {dimension_numbers = #tpu.dot_dimension_numbers<[1], [0], [0], [1], [0, 0, 1, 1], [], []>} : vector<8x128xbf16>, vector<128x128xbf16>, vector<8x128xf32> -> vector<8x128xf32>
    %182 = arith.addf %177, %181 : vector<8x128xf32>
    %183 = vector.extract_strided_slice %143 {offsets = [64, 0], sizes = [8, 128], strides = [1, 1]} : vector<72x128xbf16> to vector<8x128xbf16>
    %c8_112 = arith.constant 8 : index
    %c0_113 = arith.constant 0 : index
    %c0_114 = arith.constant 0 : index
    %184 = vector.load %arg7[%c8_112, %c0_113, %c0_114] : memref<9x128x128xbf16, #tpu.memory_space<vmem>>, vector<1x128x128xbf16>
    %185 = vector.shape_cast %184 : vector<1x128x128xbf16> to vector<128x128xbf16>
    %cst_115 = arith.constant dense<0.000000e+00> : vector<8x128xf32>
    %186 = tpu.matmul %183, %185, %cst_115 {dimension_numbers = #tpu.dot_dimension_numbers<[1], [0], [0], [1], [0, 0, 1, 1], [], []>} : vector<8x128xbf16>, vector<128x128xbf16>, vector<8x128xf32> -> vector<8x128xf32>
    %187 = arith.addf %182, %186 : vector<8x128xf32>
    %cst_116 = arith.constant dense<0.000000e+00> : vector<128xf32>
    %188 = vector.multi_reduction <add>, %187, %cst_116 [0] : vector<8x128xf32> to vector<128xf32>
    %189 = vector.shape_cast %188 : vector<128xf32> to vector<1x128xf32>
    %cst_117 = arith.constant 1.250000e-01 : f32
    %190 = vector.broadcast %cst_117 : f32 to vector<1x128xf32>
    %191 = arith.mulf %189, %190 : vector<1x128xf32>
    %192 = arith.mulf %187, %187 : vector<8x128xf32>
    %cst_118 = arith.constant dense<0.000000e+00> : vector<128xf32>
    %193 = vector.multi_reduction <add>, %192, %cst_118 [0] : vector<8x128xf32> to vector<128xf32>
    %194 = vector.shape_cast %193 : vector<128xf32> to vector<1x128xf32>
    %cst_119 = arith.constant 1.250000e-01 : f32
    %195 = vector.broadcast %cst_119 : f32 to vector<1x128xf32>
    %196 = arith.mulf %194, %195 : vector<1x128xf32>
    %197 = arith.mulf %191, %191 : vector<1x128xf32>
    %198 = arith.subf %196, %197 : vector<1x128xf32>
    %cst_120 = arith.constant 0.000000e+00 : f32
    %199 = vector.broadcast %cst_120 : f32 to vector<1x128xf32>
    %200 = arith.maximumf %198, %199 : vector<1x128xf32>
    %c0_121 = arith.constant 0 : index
    %c0_122 = arith.constant 0 : index
    %201 = vector.load %arg8[%c0_121, %c0_122] : memref<2x128xf32, #tpu.memory_space<vmem>>, vector<1x128xf32>
    %cst_123 = arith.constant 9.99999974E-6 : f32
    %202 = vector.broadcast %cst_123 : f32 to vector<1x128xf32>
    %203 = arith.addf %200, %202 : vector<1x128xf32>
    %204 = math.rsqrt %203 : vector<1x128xf32>
    %205 = arith.mulf %201, %204 : vector<1x128xf32>
    %c1_124 = arith.constant 1 : index
    %c0_125 = arith.constant 0 : index
    %206 = vector.load %arg8[%c1_124, %c0_125] : memref<2x128xf32, #tpu.memory_space<vmem>>, vector<1x128xf32>
    %207 = arith.mulf %191, %205 : vector<1x128xf32>
    %208 = arith.subf %206, %207 : vector<1x128xf32>
    %209 = vector.broadcast %205 : vector<1x128xf32> to vector<8x128xf32>
    %210 = arith.mulf %187, %209 : vector<8x128xf32>
    %211 = vector.broadcast %208 : vector<1x128xf32> to vector<8x128xf32>
    %212 = arith.addf %210, %211 : vector<8x128xf32>
    %cst_126 = arith.constant 0.000000e+00 : f32
    %213 = vector.broadcast %cst_126 : f32 to vector<8x128xf32>
    %214 = arith.maximumf %212, %213 : vector<8x128xf32>
    %215 = arith.truncf %214 : vector<8x128xf32> to vector<8x128xbf16>
    %c0_127 = arith.constant 0 : index
    %c0_128 = arith.constant 0 : index
    %216 = vector.load %arg9[%c0_127, %c0_128] : memref<32x8xbf16, #tpu.memory_space<vmem>>, vector<32x8xbf16>
    %cst_129 = arith.constant dense<0.000000e+00> : vector<32x128xf32>
    %217 = tpu.matmul %216, %215, %cst_129 {dimension_numbers = #tpu.dot_dimension_numbers<[1], [0], [0], [1], [0, 0, 1, 1], [], []>} : vector<32x8xbf16>, vector<8x128xbf16>, vector<32x128xf32> -> vector<32x128xf32>
    %218 = arith.truncf %217 : vector<32x128xf32> to vector<32x128xbf16>
    %219 = vector.extract_strided_slice %218 {offsets = [0, 0], sizes = [8, 128], strides = [1, 1]} : vector<32x128xbf16> to vector<8x128xbf16>
    %c0_130 = arith.constant 0 : index
    %c0_131 = arith.constant 0 : index
    %c0_132 = arith.constant 0 : index
    %220 = vector.load %arg10[%c0_130, %c0_131, %c0_132] : memref<4x128x32xbf16, #tpu.memory_space<vmem>>, vector<1x128x32xbf16>
    %221 = vector.shape_cast %220 : vector<1x128x32xbf16> to vector<128x32xbf16>
    %cst_133 = arith.constant dense<0.000000e+00> : vector<8x32xf32>
    %222 = tpu.matmul %219, %221, %cst_133 {dimension_numbers = #tpu.dot_dimension_numbers<[1], [0], [0], [1], [0, 0, 1, 1], [], []>} : vector<8x128xbf16>, vector<128x32xbf16>, vector<8x32xf32> -> vector<8x32xf32>
    %223 = vector.extract_strided_slice %218 {offsets = [8, 0], sizes = [8, 128], strides = [1, 1]} : vector<32x128xbf16> to vector<8x128xbf16>
    %c1_134 = arith.constant 1 : index
    %c0_135 = arith.constant 0 : index
    %c0_136 = arith.constant 0 : index
    %224 = vector.load %arg10[%c1_134, %c0_135, %c0_136] : memref<4x128x32xbf16, #tpu.memory_space<vmem>>, vector<1x128x32xbf16>
    %225 = vector.shape_cast %224 : vector<1x128x32xbf16> to vector<128x32xbf16>
    %cst_137 = arith.constant dense<0.000000e+00> : vector<8x32xf32>
    %226 = tpu.matmul %223, %225, %cst_137 {dimension_numbers = #tpu.dot_dimension_numbers<[1], [0], [0], [1], [0, 0, 1, 1], [], []>} : vector<8x128xbf16>, vector<128x32xbf16>, vector<8x32xf32> -> vector<8x32xf32>
    %227 = arith.addf %222, %226 : vector<8x32xf32>
    %228 = vector.extract_strided_slice %218 {offsets = [16, 0], sizes = [8, 128], strides = [1, 1]} : vector<32x128xbf16> to vector<8x128xbf16>
    %c2_138 = arith.constant 2 : index
    %c0_139 = arith.constant 0 : index
    %c0_140 = arith.constant 0 : index
    %229 = vector.load %arg10[%c2_138, %c0_139, %c0_140] : memref<4x128x32xbf16, #tpu.memory_space<vmem>>, vector<1x128x32xbf16>
    %230 = vector.shape_cast %229 : vector<1x128x32xbf16> to vector<128x32xbf16>
    %cst_141 = arith.constant dense<0.000000e+00> : vector<8x32xf32>
    %231 = tpu.matmul %228, %230, %cst_141 {dimension_numbers = #tpu.dot_dimension_numbers<[1], [0], [0], [1], [0, 0, 1, 1], [], []>} : vector<8x128xbf16>, vector<128x32xbf16>, vector<8x32xf32> -> vector<8x32xf32>
    %232 = arith.addf %227, %231 : vector<8x32xf32>
    %233 = vector.extract_strided_slice %218 {offsets = [24, 0], sizes = [8, 128], strides = [1, 1]} : vector<32x128xbf16> to vector<8x128xbf16>
    %c3_142 = arith.constant 3 : index
    %c0_143 = arith.constant 0 : index
    %c0_144 = arith.constant 0 : index
    %234 = vector.load %arg10[%c3_142, %c0_143, %c0_144] : memref<4x128x32xbf16, #tpu.memory_space<vmem>>, vector<1x128x32xbf16>
    %235 = vector.shape_cast %234 : vector<1x128x32xbf16> to vector<128x32xbf16>
    %cst_145 = arith.constant dense<0.000000e+00> : vector<8x32xf32>
    %236 = tpu.matmul %233, %235, %cst_145 {dimension_numbers = #tpu.dot_dimension_numbers<[1], [0], [0], [1], [0, 0, 1, 1], [], []>} : vector<8x128xbf16>, vector<128x32xbf16>, vector<8x32xf32> -> vector<8x32xf32>
    %237 = arith.addf %232, %236 : vector<8x32xf32>
    %238 = vector.extract_strided_slice %237 {offsets = [0, 0], sizes = [2, 32], strides = [1, 1]} : vector<8x32xf32> to vector<2x32xf32>
    %c0_146 = arith.constant 0 : index
    %c0_147 = arith.constant 0 : index
    %239 = vector.load %arg11[%c0_146, %c0_147] : memref<1x32xf32, #tpu.memory_space<vmem>>, vector<1x32xf32>
    %240 = vector.broadcast %239 : vector<1x32xf32> to vector<2x32xf32>
    %241 = arith.addf %238, %240 : vector<2x32xf32>
    %c0_148 = arith.constant 0 : index
    %c0_149 = arith.constant 0 : index
    %242 = vector.load %arg12[%c0_148, %c0_149] : memref<2x32xf32, #tpu.memory_space<vmem>>, vector<2x32xf32>
    tpu.vector_store %arg12[%c0_148, %c0_149], %241 {strides = array<i32>} : memref<2x32xf32, #tpu.memory_space<vmem>>, vector<2x32xf32>,
    return
  }
}

</mosaic_0001>

<bundles_post_ra>
// kernel: ae_encoder_forward.1
= control target key start
LH: loop header
LB: loop body
LE: loop exit
PB: predicated region body
PF: predicated region fallthrough
CT: control target
= control target key end

     0   :  { %s8223_s0 = inlined_call_operand.vmem [shape: bf16[128,128], index: 0, kind: input, shape index: {}]   ;;  %s8224_s1 = inlined_call_operand.vmem [shape: bf16[128,128], index: 1, kind: input, shape index: {}]   ;;  %s8225_s2 = inlined_call_operand.vmem [shape: f32[2,128], index: 2, kind: input, shape index: {}]   ;;  %s8226_s3 = inlined_call_operand.vmem [shape: bf16[512,128], index: 3, kind: input, shape index: {}]   ;;  %s8227_s4 = inlined_call_operand.vmem [shape: bf16[16,128,128], index: 4, kind: input, shape index: {}]   ;;  %s8228_s5 = inlined_call_operand.vmem [shape: f32[2,128], index: 5, kind: input, shape index: {}]   ;;  %s8229_s6 = inlined_call_operand.vmem [shape: bf16[72,32], index: 6, kind: input, shape index: {}]   ;;  %s8230_s7 = inlined_call_operand.vmem [shape: bf16[9,128,128], index: 7, kind: input, shape index: {}]   ;;  %s8231_s8 = inlined_call_operand.vmem [shape: f32[2,128], index: 8, kind: input, shape index: {}]   ;;  %s8232_s9 = inlined_call_operand.vmem [shape: bf16[32,8], index: 9, kind: input, shape index: {}]   ;;  %s8233_s10 = inlined_call_operand.vmem [shape: bf16[4,128,32], index: 10, kind: input, shape index: {}]   ;;  %s8234_s11 = inlined_call_operand.vmem [shape: f32[1,32], index: 11, kind: input, shape index: {}]   ;;  %s8235_s12 = inlined_call_operand.hbm [shape: f32[2,32], index: 12, kind: output, shape index: {}]  }
   0x1   :  { %v6438_v0 = vld [vmem:[%s8224_s1] sm:$0xff]   ;;  %v6439_v1 = vld [vmem:[%s8224_s1 + $0x8] sm:$0xff]   ;;  %v6440_v2 = vld [vmem:[%s8224_s1 + $0x10] sm:$0xff]  }
   0x2   :  { %5620 = vmatprep.subr.bf16.mxu0 %v6438_v0  ;;  %v6441_v3 = vld [vmem:[%s8224_s1 + $0x18] sm:$0xff]   ;;  %v6446_v4 = vld [vmem:[%s8223_s0] sm:$0xff]   ;;  %v6443_v6 = vld [vmem:[%s8224_s1 + $0x28] sm:$0xff]  }
   0x3   :  { %5621 = vmatpush3.bf16.msra.mxu0 %v6438_v0  ;;  %5636 = vmatprep.mubr.bf16.mxu0 %v6446_v4  ;;  %v6442_v5 = vld [vmem:[%s8224_s1 + $0x20] sm:$0xff]   ;;  %v6444_v7 = vld [vmem:[%s8224_s1 + $0x30] sm:$0xff]   ;;  %v6445_v8 = vld [vmem:[%s8224_s1 + $0x38] sm:$0xff]  }
   0x4   :  { %5622 = vmatprep.subr.bf16.mxu0 %v6439_v1  ;;  %v6447_v9 = vld [vmem:[%s8223_s0 + $0x8] sm:$0xff]   ;;  %v6448_v10 = vld [vmem:[%s8223_s0 + $0x10] sm:$0xff]   ;;  %v6449_v11 = vld [vmem:[%s8223_s0 + $0x18] sm:$0xff]  }
   0x5   :  { %v6450_v12 = vld [vmem:[%s8223_s0 + $0x20] sm:$0xff]   ;;  %v6451_v13 = vld [vmem:[%s8223_s0 + $0x28] sm:$0xff]   ;;  %v6452_v14 = vld [vmem:[%s8223_s0 + $0x30] sm:$0xff]  }
   0x6   :  { %v6453_v15 = vld [vmem:[%s8223_s0 + $0x38] sm:$0xff]  }
   0x7   :  { %5623 = vmatpush3.bf16.msra.mxu0 %v6439_v1 }
   0x8   :  { %5624 = vmatprep.subr.bf16.mxu0 %v6440_v2 }
   0xb   :  { %5625 = vmatpush3.bf16.msra.mxu0 %v6440_v2 }
   0xc   :  { %5626 = vmatprep.subr.bf16.mxu0 %v6441_v3 }
   0xf   :  { %5627 = vmatpush3.bf16.msra.mxu0 %v6441_v3 }
  0x10   :  { %5628 = vmatprep.subr.bf16.mxu0 %v6442_v5 }
  0x13   :  { %5629 = vmatpush3.bf16.msra.mxu0 %v6442_v5 }
  0x14   :  { %5630 = vmatprep.subr.bf16.mxu0 %v6443_v6 }
  0x17   :  { %5631 = vmatpush3.bf16.msra.mxu0 %v6443_v6 }
  0x18   :  { %5632 = vmatprep.subr.bf16.mxu0 %v6444_v7 }
  0x1b   :  { %5633 = vmatpush3.bf16.msra.mxu0 %v6444_v7 }
  0x1c   :  { %5634 = vmatprep.subr.bf16.mxu0 %v6445_v8 }
  0x1f   :  { %5635 = vmatpush3.bf16.msra.mxu0 %v6445_v8 }
  0x22   :  { %5637 = vmatmul.mubr.bf16.vlgmr.msra.gmra.mrb[0].mxu0 %v6447_v9 }
  0x23   :  { %5640 = vmatprep.mubr.bf16.mxu0 %v6448_v10 }
  0x2a   :  { %5641 = vmatmul.mubr.bf16.gmra.mrb[4].mxu0 %v6449_v11 }
  0x2b   :  { %5644 = vmatprep.mubr.bf16.mxu0 %v6450_v12 }
  0x32   :  { %5645 = vmatmul.mubr.bf16.gmra.mrb[8].mxu0 %v6451_v13 }
  0x33   :  { %5648 = vmatprep.mubr.bf16.mxu0 %v6452_v14 }
  0x3a   :  { %5649 = vmatmul.mubr.bf16.gmra.mrb[12].mxu0 %v6453_v15 }
  0x3b   :  { %17 = vsyncpa [#allocation3], 0  ;;  %v6454_v16 = vld [vmem:[%s8226_s3] sm:$0xff]   ;;  %vm6756_vm0 = vmmov 0   ;;  %vm2946_vm1 = vcmask 261120   ;;  %vm4053_vm2 = vcmask 64512  }
  0x3c   :  { %5668 = vmatprep.mubr.bf16.mxu1 %v6454_v16  ;;  %vm4060_vm3 = vcmask 1043456   ;;  %vm4550_vm4 = vcmask 254976  }
  0xf5   :  { %v6874_v17 = vpop.f32.mrb[0].mxu0 }
  0xf6   :  { %v6876_v18 = vpop.f32.mrb[1].mxu0  ;;  %v292_v24 = vmul.f32 %v6874_v17, %v6874_v17 }
  0xf7   :  { %v6878_v19 = vpop.f32.mrb[2].mxu0  ;;  %v290_v21 = vmul.f32 %v6876_v18, %v6876_v18 }
  0xf8   :  { %v6880_v20 = vpop.f32.mrb[3].mxu0  ;;  %v293_v27 = vmul.f32 %v6878_v19, %v6878_v19 }
  0xf9   :  { %v268_v22 = vadd.f32 %v6880_v20, %v6876_v18  ;;  %v291_v23 = vmul.f32 %v6880_v20, %v6880_v20 }
  0xfb   :  { %v269_v25 = vadd.f32 %v6874_v17, %v268_v22  ;;  %v306_v26 = vadd.f32 %v291_v23, %v290_v21 }
  0xfd   :  { %v307_v28 = vadd.f32 %v306_v26, %v292_v24  ;;  %v6893_v29 = vpop.f32.mrb[4].mxu0  ;;  %v270_v30 = vadd.f32 %v6878_v19, %v269_v25 }
  0xfe   :  { %v6896_v31 = vpop.f32.mrb[5].mxu0  ;;  %v296_v40 = vmul.f32 %v6893_v29, %v6893_v29 }
  0xff   :  { %v271_v32 = vadd.f32 %v270_v30, %v6896_v31  ;;  %v294_v33 = vmul.f32 %v6896_v31, %v6896_v31  ;;  %v308_v34 = vadd.f32 %v307_v28, %v293_v27  ;;  %v6901_v35 = vpop.f32.mrb[6].mxu0 }
 0x100   :  { %v6903_v36 = vpop.f32.mrb[7].mxu0  ;;  %v297_v43 = vmul.f32 %v6901_v35, %v6901_v35 }
 0x101   :  { %v309_v37 = vadd.f32 %v308_v34, %v294_v33  ;;  %v272_v38 = vadd.f32 %v271_v32, %v6903_v36  ;;  %v295_v39 = vmul.f32 %v6903_v36, %v6903_v36 }
 0x103   :  { %v273_v41 = vadd.f32 %v6893_v29, %v272_v38  ;;  %v310_v42 = vadd.f32 %v309_v37, %v295_v39 }
 0x105   :  { %v311_v44 = vadd.f32 %v310_v42, %v296_v40  ;;  %v6913_v45 = vpop.f32.mrb[8].mxu0  ;;  %v274_v46 = vadd.f32 %v6901_v35, %v273_v41  ;;  %v338_v41 = vlaneseq  ;;  %v6474_v42 = vld [vmem:[%s8227_s4] sm:$0xff]  }
 0x106   :  { %v6916_v47 = vpop.f32.mrb[9].mxu0  ;;  %v300_v56 = vmul.f32 %v6913_v45, %v6913_v45  ;;  %5752 = vmatprep.subr.bf16.mxu0 %v6474_v42 }
 0x107   :  { %v275_v48 = vadd.f32 %v274_v46, %v6916_v47  ;;  %v298_v49 = vmul.f32 %v6916_v47, %v6916_v47  ;;  %v312_v50 = vadd.f32 %v311_v44, %v297_v43  ;;  %v6921_v51 = vpop.f32.mrb[10].mxu0  ;;  %5753 = vmatpush3.bf16.msra.mxu0 %v6474_v42  ;;  %v339_v43 = vshrl.u32 %v338_v41, 7  ;;  %v331_v44 = vld [vmem:[%s8225_s2] sm:$0x1]  ;;  %v6488_v42 = vld [vmem:[%s8227_s4 + $0x30] sm:$0xff]  }
 0x108   :  { %v6923_v52 = vpop.f32.mrb[11].mxu0  ;;  %v301_v59 = vmul.f32 %v6921_v51, %v6921_v51 }
 0x109   :  { %v313_v53 = vadd.f32 %v312_v50, %v298_v49  ;;  %v276_v54 = vadd.f32 %v275_v48, %v6923_v52  ;;  %v299_v55 = vmul.f32 %v6923_v52, %v6923_v52  ;;  %v6955_v46 = vsub.s32 0, %v339_v43  ;;  %v6477_v48 = vld [vmem:[%s8227_s4 + $0x8] sm:$0xff]   ;;  %v6478_v49 = vld [vmem:[%s8227_s4 + $0x10] sm:$0xff]  }
 0x10a   :  { %5754 = vmatprep.subr.bf16.mxu0 %v6477_v48 }
 0x10b   :  { %v277_v57 = vadd.f32 %v6913_v45, %v276_v54  ;;  %v314_v58 = vadd.f32 %v313_v53, %v299_v55  ;;  %v335_v54 = vld [vmem:[%s8225_s2 + $0x1] sm:$0x1]  ;;  %5755 = vmatpush3.bf16.msra.mxu0 %v6477_v48 }
 0x10c   :  { %5756 = vmatprep.subr.bf16.mxu0 %v6478_v49 }
 0x10d   :  { %v315_v60 = vadd.f32 %v314_v58, %v300_v56  ;;  %v6933_v61 = vpop.f32.mrb[12].mxu0  ;;  %v278_v62 = vadd.f32 %v6921_v51, %v277_v57 }
 0x10e   :  { %v6936_v63 = vpop.f32.mrb[13].mxu0  ;;  %v304_v8 = vmul.f32 %v6933_v61, %v6933_v61 }
 0x10f   :  { %v279_v0 = vadd.f32 %v278_v62, %v6936_v63  ;;  %v302_v1 = vmul.f32 %v6936_v63, %v6936_v63  ;;  %v316_v2 = vadd.f32 %v315_v60, %v301_v59  ;;  %v6941_v3 = vpop.f32.mrb[14].mxu0  ;;  %5757 = vmatpush3.bf16.msra.mxu0 %v6478_v49 }
 0x110   :  { %v256_v4 = vpop.f32.mrb[15].mxu0  ;;  %v305_v11 = vmul.f32 %v6941_v3, %v6941_v3 }
 0x111   :  { %v317_v5 = vadd.f32 %v316_v2, %v302_v1  ;;  %v280_v6 = vadd.f32 %v279_v0, %v256_v4  ;;  %v303_v7 = vmul.f32 %v256_v4, %v256_v4 }
 0x113   :  { %v281_v9 = vadd.f32 %v6933_v61, %v280_v6  ;;  %v318_v10 = vadd.f32 %v317_v5, %v303_v7 }
 0x115   :  { %v282_v12 = vadd.f32 %v6941_v3, %v281_v9  ;;  %v319_v13 = vadd.f32 %v318_v10, %v304_v8 }
 0x117   :  { %v283_v14 = vrot.slane %v282_v12, 4  ;;  %v320_v15 = vadd.f32 %v319_v13, %v305_v11 }
 0x119   :  { %v284_v16 = vadd.f32 %v283_v14, %v282_v12  ;;  %v321_v21 = vrot.slane %v320_v15, 4 }
 0x11b   :  { %v285_v22 = vrot.slane %v284_v16, 2  ;;  %v322_v23 = vadd.f32 %v321_v21, %v320_v15 }
 0x11d   :  { %v286_v24 = vadd.f32 %v285_v22, %v284_v16  ;;  %v323_v25 = vrot.slane %v322_v23, 2 }
 0x11f   :  { %v287_v26 = vrot.slane %v286_v24, 1  ;;  %v324_v27 = vadd.f32 %v323_v25, %v322_v23 }
 0x121   :  { %v288_v28 = vadd.f32 %v287_v26, %v286_v24  ;;  %v325_v30 = vrot.slane %v324_v27, 1 }
 0x123   :  { %v289_v32 = vmul.f32 0.0078125, %v288_v28  ;;  %v326_v33 = vadd.f32 %v325_v30, %v324_v27 }
 0x125   :  { %v327_v34 = vmul.f32 0.0078125, %v326_v33  ;;  %v328_v37 = vmul.f32 %v289_v32, %v289_v32 }
 0x127   :  { %v329_v38 = vsub.f32 %v327_v34, %v328_v37  ;;  %v6486_v37 = vld [vmem:[%s8227_s4 + $0x28] sm:$0xff]  }
 0x129   :  { %v330_v39 = vmax.f32 %v329_v38, 0.0 }
 0x12b   :  { %v332_v40 = vadd.f32 1e-05, %v330_v39 }
 0x12d   :  { %6725 = vrsqrt.f32 %v332_v40 }
 0x137   :  { %v6726_v50 = vpop.eup %6725 }
 0x138   :  { %v334_v53 = vmul.f32 %v6726_v50, %v331_v44 }
 0x13a   :  { %v336_v55 = vmul.f32 %v334_v53, %v289_v32  ;;  %v6967_v56 = vrot.slane %v334_v53, %v6955_v46 }
 0x13c   :  { %v337_v57 = vsub.f32 %v335_v54, %v336_v55  ;;  %v355_v58 = vmul.f32 %v6967_v56, %v256_v4  ;;  %v342_v59 = vmul.f32 %v6967_v56, %v6876_v18  ;;  %v343_v60 = vmul.f32 %v6967_v56, %v6880_v20 }
 0x13d   :  { %v344_v62 = vmul.f32 %v6874_v17, %v6967_v56  ;;  %v345_v0 = vmul.f32 %v6878_v19, %v6967_v56  ;;  %v346_v1 = vmul.f32 %v6967_v56, %v6896_v31  ;;  %v347_v2 = vmul.f32 %v6967_v56, %v6903_v36  ;;  %v6481_v19 = vld [vmem:[%s8227_s4 + $0x18] sm:$0xff]   ;;  %v6482_v31 = vld [vmem:[%s8227_s4 + $0x20] sm:$0xff]  }
 0x13e   :  { %v361_v4 = vrot.slane %v337_v57, %v6955_v46  ;;  %v348_v18 = vmul.f32 %v6893_v29, %v6967_v56  ;;  %v349_v20 = vmul.f32 %v6901_v35, %v6967_v56  ;;  %v350_v17 = vmul.f32 %v6967_v56, %v6916_v47  ;;  %5758 = vmatprep.subr.bf16.mxu0 %v6481_v19 }
 0x13f   :  { %v351_v36 = vmul.f32 %v6967_v56, %v6923_v52  ;;  %v352_v29 = vmul.f32 %v6913_v45, %v6967_v56  ;;  %v353_v35 = vmul.f32 %v6921_v51, %v6967_v56  ;;  %v354_v47 = vmul.f32 %v6967_v56, %v6936_v63  ;;  %5759 = vmatpush3.bf16.msra.mxu0 %v6481_v19  ;;  %v6466_v19 = vld [vmem:[%s8226_s3 + $0x60] sm:$0xff]  }
 0x140   :  { %v375_v5 = vadd.f32 %v361_v4, %v355_v58  ;;  %v362_v6 = vadd.f32 %v361_v4, %v342_v59  ;;  %v363_v7 = vadd.f32 %v361_v4, %v343_v60  ;;  %v364_v8 = vadd.f32 %v361_v4, %v344_v62  ;;  %5760 = vmatprep.subr.bf16.mxu0 %v6482_v31  ;;  %v6456_v58 = vld [vmem:[%s8226_s3 + $0x10] sm:$0xff]   ;;  %v6487_v59 = vld [vmem:[%s8227_s4 + $0x48] sm:$0xff]   ;;  %v6457_v60 = vld [vmem:[%s8226_s3 + $0x18] sm:$0xff]  }
 0x141   :  { %v365_v9 = vadd.f32 %v361_v4, %v345_v0  ;;  %v366_v10 = vadd.f32 %v361_v4, %v346_v1  ;;  %v367_v11 = vadd.f32 %v361_v4, %v347_v2  ;;  %v368_v12 = vadd.f32 %v361_v4, %v348_v18  ;;  %v6458_v62 = vld [vmem:[%s8226_s3 + $0x20] sm:$0xff]   ;;  %v6459_v0 = vld [vmem:[%s8226_s3 + $0x28] sm:$0xff]   ;;  %v6460_v1 = vld [vmem:[%s8226_s3 + $0x30] sm:$0xff]  }
 0x142   :  { %v378_v52 = vmax.f32 %v362_v6, 0.0  ;;  %v379_v13 = vmax.f32 %v363_v7, 0.0  ;;  %v380_v14 = vmax.f32 %v364_v8, 0.0  ;;  %v369_v45 = vadd.f32 %v361_v4, %v349_v20  ;;  %v6461_v2 = vld [vmem:[%s8226_s3 + $0x38] sm:$0xff]   ;;  %v6463_v18 = vld [vmem:[%s8226_s3 + $0x48] sm:$0xff]   ;;  %v6464_v20 = vld [vmem:[%s8226_s3 + $0x50] sm:$0xff]  }
 0x143   :  { %v381_v15 = vmax.f32 %v365_v9, 0.0  ;;  %v382_v51 = vmax.f32 %v366_v10, 0.0  ;;  %v383_v16 = vmax.f32 %v367_v11, 0.0  ;;  %v384_v21 = vmax.f32 %v368_v12, 0.0  ;;  %5761 = vmatpush3.bf16.msra.mxu0 %v6482_v31  ;;  %v6467_v31 = vld [vmem:[%s8226_s3 + $0x68] sm:$0xff]   ;;  %v6473_v6 = vld [vmem:[%s8226_s3 + $0x98] sm:$0xff]  }
 0x144   :  { %v394_v63 = vpack.c.bf16 %v379_v13, %v378_v52  ;;  %v385_v22 = vmax.f32 %v369_v45, 0.0  ;;  %v370_v23 = vadd.f32 %v361_v4, %v350_v17  ;;  %v371_v24 = vadd.f32 %v361_v4, %v351_v36  ;;  %5762 = vmatprep.subr.bf16.mxu0 %v6486_v37  ;;  %v6465_v17 = vld [vmem:[%s8226_s3 + $0x58] sm:$0xff]   ;;  %v6468_v36 = vld [vmem:[%s8226_s3 + $0x70] sm:$0xff]   ;;  %v6475_v7 = vld [vmem:[%s8226_s3 + $0xa0] sm:$0xff]  }
 0x145   :  { %v395_v25 = vpack.c.bf16 %v381_v15, %v380_v14  ;;  %v396_v26 = vpack.c.bf16 %v383_v16, %v382_v51  ;;  %v372_v27 = vadd.f32 %v361_v4, %v352_v29  ;;  %v373_v28 = vadd.f32 %v361_v4, %v353_v35  ;;  %v6469_v29 = vld [vmem:[%s8226_s3 + $0x78] sm:$0xff]   ;;  %v6470_v35 = vld [vmem:[%s8226_s3 + $0x80] sm:$0xff]   ;;  %v6476_v8 = vld [vmem:[%s8226_s3 + $0xa8] sm:$0xff]  }
 0x146   :  { %5652 = vmatprep.subr.bf16.mxu1 %v394_v63  ;;  %v397_v30 = vpack.c.bf16 %v385_v22, %v384_v21  ;;  %v386_v32 = vmax.f32 %v370_v23, 0.0  ;;  %v387_v33 = vmax.f32 %v371_v24, 0.0  ;;  %v374_v34 = vadd.f32 %v361_v4, %v354_v47  ;;  %v6471_v47 = vld [vmem:[%s8226_s3 + $0x88] sm:$0xff]   ;;  %v6479_v9 = vld [vmem:[%s8226_s3 + $0xb0] sm:$0xff]   ;;  %v6480_v11 = vld [vmem:[%s8226_s3 + $0xb8] sm:$0xff]  }
 0x147   :  { %5653 = vmatpush3.bf16.msra.mxu1 %v394_v63  ;;  %v388_v38 = vmax.f32 %v372_v27, 0.0  ;;  %v389_v39 = vmax.f32 %v373_v28, 0.0  ;;  %v391_v40 = vmax.f32 %v375_v5, 0.0  ;;  %v356_v41 = vmul.f32 %v6933_v61, %v6967_v56  ;;  %5763 = vmatpush3.bf16.msra.mxu0 %v6486_v37  ;;  %v6472_v5 = vld [vmem:[%s8226_s3 + $0x90] sm:$0xff]   ;;  %v6483_v12 = vld [vmem:[%s8226_s3 + $0xc0] sm:$0xff]   ;;  %v6492_v52 = vld [vmem:[%s8227_s4 + $0x38] sm:$0xff]  }
 0x148   :  { %5654 = vmatprep.subr.bf16.mxu1 %v395_v25  ;;  %v398_v43 = vpack.c.bf16 %v387_v33, %v386_v32  ;;  %v390_v44 = vmax.f32 %v374_v34, 0.0  ;;  %v357_v48 = vmul.f32 %v6941_v3, %v6967_v56  ;;  %5764 = vmatprep.subr.bf16.mxu0 %v6488_v42  ;;  %v6485_v3 = vld [vmem:[%s8227_s4 + $0x40] sm:$0xff]   ;;  %v6455_v56 = vld [vmem:[%s8226_s3 + $0x8] sm:$0xff]   ;;  %v6491_v10 = vld [vmem:[%s8227_s4 + $0x50] sm:$0xff]  }
 0x149   :  { %v399_v49 = vpack.c.bf16 %v389_v39, %v388_v38  ;;  %v376_v50 = vadd.f32 %v361_v4, %v356_v41  ;;  %v6493_v13 = vld [vmem:[%s8227_s4 + $0x58] sm:$0xff]   ;;  %v6494_v14 = vld [vmem:[%s8227_s4 + $0x80] sm:$0xff]   ;;  %v6484_v15 = vld [vmem:[%s8226_s3 + $0xc8] sm:$0xff]  }
 0x14a   :  { %v400_v53 = vpack.c.bf16 %v391_v40, %v390_v44  ;;  %v377_v54 = vadd.f32 %v361_v4, %v357_v48  ;;  %v6462_v4 = vld [vmem:[%s8226_s3 + $0x40] sm:$0xff]   ;;  %v6489_v51 = vld [vmem:[%s8226_s3 + $0xd0] sm:$0xff]   ;;  %v6499_v16 = vld [vmem:[%s8227_s4 + $0x68] sm:$0xff]  }
 0x14b   :  { %5655 = vmatpush3.bf16.msra.mxu1 %v395_v25  ;;  %v392_v55 = vmax.f32 %v376_v50, 0.0  ;;  %5765 = vmatpush3.bf16.msra.mxu0 %v6488_v42  ;;  %v6497_v45 = vld [vmem:[%s8227_s4 + $0x60] sm:$0xff]   ;;  %v6503_v21 = vld [vmem:[%s8227_s4 + $0x70] sm:$0xff]   ;;  %v6490_v63 = vld [vmem:[%s8226_s3 + $0xd8] sm:$0xff]  }
 0x14c   :  { %5656 = vmatprep.subr.bf16.mxu1 %v396_v26  ;;  %v393_v61 = vmax.f32 %v377_v54, 0.0  ;;  %5766 = vmatprep.subr.bf16.mxu0 %v6492_v52  ;;  %v6495_v22 = vld [vmem:[%s8226_s3 + $0xe0] sm:$0xff]   ;;  %v6505_v23 = vld [vmem:[%s8227_s4 + $0x78] sm:$0xff]   ;;  %v6496_v24 = vld [vmem:[%s8226_s3 + $0xe8] sm:$0xff]  }
 0x14d   :  { %v6501_v25 = vld [vmem:[%s8226_s3 + $0xf0] sm:$0xff]   ;;  %v6498_v37 = vld [vmem:[%s8227_s4 + $0x88] sm:$0xff]   ;;  %v6504_v48 = vld [vmem:[%s8227_s4 + $0x98] sm:$0xff]  }
 0x14e   :  { %v401_v57 = vpack.c.bf16 %v393_v61, %v392_v55  ;;  %v6500_v39 = vld [vmem:[%s8227_s4 + $0x90] sm:$0xff]   ;;  %v6506_v50 = vld [vmem:[%s8227_s4 + $0xa0] sm:$0xff]  }
 0x14f   :  { %5657 = vmatpush3.bf16.msra.mxu1 %v396_v26  ;;  %5767 = vmatpush3.bf16.msra.mxu0 %v6492_v52  ;;  %v6502_v26 = vld [vmem:[%s8226_s3 + $0xf8] sm:$0xff]  }
 0x150   :  { %5658 = vmatprep.subr.bf16.mxu1 %v397_v30  ;;  %5772 = vmatprep.subr.bf16.mxu0 %v6494_v14 }
 0x153   :  { %5659 = vmatpush3.bf16.msra.mxu1 %v397_v30 }
 0x154   :  { %5660 = vmatprep.subr.bf16.mxu1 %v398_v43 }
 0x157   :  { %5661 = vmatpush3.bf16.msra.mxu1 %v398_v43 }
 0x158   :  { %5662 = vmatprep.subr.bf16.mxu1 %v399_v49 }
 0x15b   :  { %5663 = vmatpush3.bf16.msra.mxu1 %v399_v49 }
 0x15c   :  { %5664 = vmatprep.subr.bf16.mxu1 %v400_v53 }
 0x15f   :  { %5665 = vmatpush3.bf16.msra.mxu1 %v400_v53 }
 0x160   :  { %5666 = vmatprep.subr.bf16.mxu1 %v401_v57 }
 0x163   :  { %5667 = vmatpush3.bf16.msra.mxu1 %v401_v57 }
 0x164   :  { %5732 = vmatprep.subr.bf16.mxu1 %v6485_v3 }
 0x166   :  { %5669 = vmatmul.mubr.bf16.vlgmr.msra.gmra.mrb[0].mxu1 %v6455_v56 }
 0x167   :  { %5672 = vmatprep.mubr.bf16.mxu1 %v6456_v58  ;;  %5733 = vmatpush3.bf16.msra.mxu1 %v6485_v3  ;;  %v6507_v3 = vld [vmem:[%s8227_s4 + $0xa8] sm:$0xff]   ;;  %v6508_v58 = vld [vmem:[%s8227_s4 + $0xb0] sm:$0xff]  }
 0x168   :  { %5734 = vmatprep.subr.bf16.mxu1 %v6487_v59 }
 0x16b   :  { %5735 = vmatpush3.bf16.msra.mxu1 %v6487_v59 }
 0x16c   :  { %5736 = vmatprep.subr.bf16.mxu1 %v6491_v10 }
 0x16e   :  { %5673 = vmatmul.mubr.bf16.gmra.mrb[4].mxu1 %v6457_v60 }
 0x16f   :  { %5676 = vmatprep.mubr.bf16.mxu1 %v6458_v62  ;;  %5737 = vmatpush3.bf16.msra.mxu1 %v6491_v10  ;;  %v6513_v10 = vld [vmem:[%s8227_s4 + $0xd8] sm:$0xff]  }
 0x170   :  { %5738 = vmatprep.subr.bf16.mxu1 %v6493_v13 }
 0x173   :  { %5739 = vmatpush3.bf16.msra.mxu1 %v6493_v13 }
 0x174   :  { %5740 = vmatprep.subr.bf16.mxu1 %v6497_v45 }
 0x176   :  { %5677 = vmatmul.mubr.bf16.gmra.mrb[8].mxu1 %v6459_v0 }
 0x177   :  { %5680 = vmatprep.mubr.bf16.mxu1 %v6460_v1  ;;  %5741 = vmatpush3.bf16.msra.mxu1 %v6497_v45 }
 0x178   :  { %5742 = vmatprep.subr.bf16.mxu1 %v6499_v16 }
 0x17b   :  { %5743 = vmatpush3.bf16.msra.mxu1 %v6499_v16  ;;  %v6516_v16 = vld [vmem:[%s8227_s4 + $0xf0] sm:$0xff]  }
 0x17c   :  { %5744 = vmatprep.subr.bf16.mxu1 %v6503_v21 }
 0x17e   :  { %5681 = vmatmul.mubr.bf16.gmra.mrb[12].mxu1 %v6461_v2  ;;  %v6509_v2 = vld [vmem:[%s8227_s4 + $0xb8] sm:$0xff]  }
 0x17f   :  { %5684 = vmatprep.mubr.bf16.mxu1 %v6462_v4  ;;  %5745 = vmatpush3.bf16.msra.mxu1 %v6503_v21 }
 0x180   :  { %5746 = vmatprep.subr.bf16.mxu1 %v6505_v23 }
 0x183   :  { %5747 = vmatpush3.bf16.msra.mxu1 %v6505_v23 }
 0x186   :  { %5685 = vmatmul.mubr.bf16.gmra.mrb[16].mxu1 %v6463_v18  ;;  %v6510_v18 = vld [vmem:[%s8227_s4 + $0xc0] sm:$0xff]  }
 0x187   :  { %5688 = vmatprep.mubr.bf16.mxu1 %v6464_v20 }
 0x18e   :  { %5689 = vmatmul.mubr.bf16.gmra.mrb[20].mxu1 %v6465_v17 }
 0x18f   :  { %5692 = vmatprep.mubr.bf16.mxu1 %v6466_v19 }
 0x196   :  { %5693 = vmatmul.mubr.bf16.gmra.mrb[24].mxu1 %v6467_v31 }
 0x197   :  { %5696 = vmatprep.mubr.bf16.mxu1 %v6468_v36 }
 0x19e   :  { %5697 = vmatmul.mubr.bf16.gmra.mrb[28].mxu1 %v6469_v29  ;;  %v6511_v29 = vld [vmem:[%s8227_s4 + $0xc8] sm:$0xff]  }
 0x19f   :  { %5700 = vmatprep.mubr.bf16.mxu1 %v6470_v35 }
 0x1a6   :  { %5701 = vmatmul.mubr.bf16.gmra.mrb[32].mxu1 %v6471_v47  ;;  %v6512_v47 = vld [vmem:[%s8227_s4 + $0xd0] sm:$0xff]  }
 0x1a7   :  { %5704 = vmatprep.mubr.bf16.mxu1 %v6472_v5 }
 0x1ae   :  { %5705 = vmatmul.mubr.bf16.gmra.mrb[36].mxu1 %v6473_v6 }
 0x1af   :  { %5708 = vmatprep.mubr.bf16.mxu1 %v6475_v7 }
 0x1b6   :  { %5709 = vmatmul.mubr.bf16.gmra.mrb[40].mxu1 %v6476_v8 }
 0x1b7   :  { %5712 = vmatprep.mubr.bf16.mxu1 %v6479_v9 }
 0x1be   :  { %5713 = vmatmul.mubr.bf16.gmra.mrb[44].mxu1 %v6480_v11 }
 0x1bf   :  { %5716 = vmatprep.mubr.bf16.mxu1 %v6483_v12  ;;  %v6514_v12 = vld [vmem:[%s8227_s4 + $0xe0] sm:$0xff]  }
 0x1c6   :  { %5717 = vmatmul.mubr.bf16.gmra.mrb[48].mxu1 %v6484_v15 }
 0x1c7   :  { %5720 = vmatprep.mubr.bf16.mxu1 %v6489_v51  ;;  %v6515_v51 = vld [vmem:[%s8227_s4 + $0xe8] sm:$0xff]  }
 0x1ce   :  { %5721 = vmatmul.mubr.bf16.gmra.mrb[52].mxu1 %v6490_v63  ;;  %v6517_v63 = vld [vmem:[%s8227_s4 + $0xf8] sm:$0xff]  }
 0x1cf   :  { %5724 = vmatprep.mubr.bf16.mxu1 %v6495_v22 }
 0x1d6   :  { %5725 = vmatmul.mubr.bf16.gmra.mrb[56].mxu1 %v6496_v24 }
 0x1d7   :  { %5728 = vmatprep.mubr.bf16.mxu1 %v6501_v25 }
 0x1de   :  { %5729 = vmatmul.mubr.bf16.gmra.mrb[60].mxu1 %v6502_v26  ;;  %v6518_v26 = vld [vmem:[%s8227_s4 + $0x100] sm:$0xff]  }
 0x239   :  { %v5670_v27 = vpop.f32.mrb[0].mxu1 }
 0x23a   :  { %v692_v28 = vpop.f32.mrb[1].mxu1 }
 0x23b   :  { %v5671_v30 = vpop.f32.mrb[2].mxu1 }
 0x23c   :  { %v948_v32 = vpack.c.bf16 %v5671_v30, %v5670_v27  ;;  %v695_v33 = vpop.f32.mrb[3].mxu1  ;;  %v6520_v30 = vld [vmem:[%s8227_s4 + $0x110] sm:$0xff]  }
 0x23d   :  { %v947_v34 = vpack.c.bf16 %v695_v33, %v692_v28  ;;  %v6519_v28 = vld [vmem:[%s8227_s4 + $0x108] sm:$0xff]  }
 0x23f   :  { %5768 = vmatprep.mubr.bf16.mxu0 %v947_v34  ;;  %v6521_v34 = vld [vmem:[%s8227_s4 + $0x118] sm:$0xff]  }
 0x240   :  { %5769 = vmatmul.mubr.bf16.vlgmr.msra.gmra.mrb[16].mxu0 %v948_v32 }
 0x241   :  { %5773 = vmatpush3.bf16.msra.mxu0 %v6494_v14  ;;  %v5674_v38 = vpop.f32.mrb[4].mxu1 }
 0x242   :  { %5774 = vmatprep.subr.bf16.mxu0 %v6498_v37  ;;  %v708_v40 = vpop.f32.mrb[5].mxu1 }
 0x243   :  { %v5675_v41 = vpop.f32.mrb[6].mxu1 }
 0x244   :  { %v950_v42 = vpack.c.bf16 %v5675_v41, %v5674_v38  ;;  %v711_v43 = vpop.f32.mrb[7].mxu1 }
 0x245   :  { %5775 = vmatpush3.bf16.msra.mxu0 %v6498_v37  ;;  %v949_v44 = vpack.c.bf16 %v711_v43, %v708_v40  ;;  %v6522_v43 = vld [vmem:[%s8227_s4 + $0x120] sm:$0xff]  }
 0x246   :  { %5776 = vmatprep.subr.bf16.mxu0 %v6500_v39 }
 0x247   :  { %5748 = vmatprep.mubr.bf16.mxu1 %v949_v44 }
 0x248   :  { %5749 = vmatmul.mubr.bf16.vlgmr.msra.gmra.mrb[64].mxu1 %v950_v42 }
 0x249   :  { %5777 = vmatpush3.bf16.msra.mxu0 %v6500_v39  ;;  %v5678_v49 = vpop.f32.mrb[8].mxu1 }
 0x24a   :  { %5778 = vmatprep.subr.bf16.mxu0 %v6504_v48  ;;  %v724_v53 = vpop.f32.mrb[9].mxu1 }
 0x24b   :  { %v5679_v54 = vpop.f32.mrb[10].mxu1 }
 0x24c   :  { %v952_v55 = vpack.c.bf16 %v5679_v54, %v5678_v49  ;;  %v727_v61 = vpop.f32.mrb[11].mxu1 }
 0x24d   :  { %5779 = vmatpush3.bf16.msra.mxu0 %v6504_v48  ;;  %v951_v57 = vpack.c.bf16 %v727_v61, %v724_v53 }
 0x24e   :  { %5780 = vmatprep.subr.bf16.mxu0 %v6506_v50 }
 0x24f   :  { %5788 = vmatprep.mubr.bf16.mxu0 %v951_v57 }
 0x251   :  { %5781 = vmatpush3.bf16.msra.mxu0 %v6506_v50  ;;  %v7151_v56 = vpop.f32.mrb[12].mxu1 }
 0x252   :  { %5782 = vmatprep.subr.bf16.mxu0 %v6507_v3  ;;  %v740_v59 = vpop.f32.mrb[13].mxu1 }
 0x253   :  { %v7156_v60 = vpop.f32.mrb[14].mxu1 }
 0x254   :  { %v954_v62 = vpack.c.bf16 %v7156_v60, %v7151_v56  ;;  %v743_v0 = vpop.f32.mrb[15].mxu1 }
 0x255   :  { %5783 = vmatpush3.bf16.msra.mxu0 %v6507_v3  ;;  %v953_v1 = vpack.c.bf16 %v743_v0, %v740_v59  ;;  %v6524_v59 = vld [vmem:[%s8227_s4 + $0x130] sm:$0xff]  }
 0x256   :  { %5784 = vmatprep.subr.bf16.mxu0 %v6508_v58 }
 0x259   :  { %5785 = vmatpush3.bf16.msra.mxu0 %v6508_v58  ;;  %v7163_v4 = vpop.f32.mrb[16].mxu1 }
 0x25a   :  { %5786 = vmatprep.subr.bf16.mxu0 %v6509_v2  ;;  %v756_v20 = vpop.f32.mrb[17].mxu1 }
 0x25b   :  { %v7168_v17 = vpop.f32.mrb[18].mxu1 }
 0x25c   :  { %v956_v19 = vpack.c.bf16 %v7168_v17, %v7163_v4  ;;  %v759_v31 = vpop.f32.mrb[19].mxu1  ;;  %v6533_v4 = vld [vmem:[%s8227_s4 + $0x178] sm:$0xff]  }
 0x25d   :  { %5787 = vmatpush3.bf16.msra.mxu0 %v6509_v2  ;;  %v955_v36 = vpack.c.bf16 %v759_v31, %v756_v20  ;;  %v6526_v31 = vld [vmem:[%s8227_s4 + $0x140] sm:$0xff]  }
 0x25e   :  { %5792 = vmatprep.subr.bf16.mxu0 %v6510_v18 }
 0x260   :  { %5789 = vmatmul.mubr.bf16.vlgmr.msra.gmra.mrb[16].mxu0 %v952_v55  ;;  %v6523_v55 = vld [vmem:[%s8227_s4 + $0x128] sm:$0xff]  }
 0x261   :  { %5793 = vmatpush3.bf16.msra.mxu0 %v6510_v18  ;;  %5808 = vmatprep.mubr.bf16.mxu0 %v953_v1  ;;  %v7175_v35 = vpop.f32.mrb[20].mxu1  ;;  %v6525_v18 = vld [vmem:[%s8227_s4 + $0x138] sm:$0xff]  }
 0x262   :  { %5794 = vmatprep.subr.bf16.mxu0 %v6511_v29  ;;  %v7180_v5 = vpop.f32.mrb[21].mxu1 }
 0x263   :  { %v7182_v6 = vpop.f32.mrb[22].mxu1 }
 0x264   :  { %v958_v7 = vpack.c.bf16 %v7182_v6, %v7175_v35  ;;  %v7186_v8 = vpop.f32.mrb[23].mxu1  ;;  %v6538_v35 = vld [vmem:[%s8227_s4 + $0x1a0] sm:$0xff]   ;;  %v6539_v6 = vld [vmem:[%s8227_s4 + $0x1a8] sm:$0xff]  }
 0x265   :  { %5795 = vmatpush3.bf16.msra.mxu0 %v6511_v29  ;;  %v957_v9 = vpack.c.bf16 %v7186_v8, %v7180_v5  ;;  %v6529_v5 = vld [vmem:[%s8227_s4 + $0x158] sm:$0xff]  }
 0x266   :  { %5796 = vmatprep.subr.bf16.mxu0 %v6512_v47 }
 0x269   :  { %5797 = vmatpush3.bf16.msra.mxu0 %v6512_v47  ;;  %v7193_v11 = vpop.f32.mrb[24].mxu1 }
 0x26a   :  { %5798 = vmatprep.subr.bf16.mxu0 %v6513_v10  ;;  %v7198_v52 = vpop.f32.mrb[25].mxu1 }
 0x26b   :  { %v7200_v13 = vpop.f32.mrb[26].mxu1 }
 0x26c   :  { %v960_v14 = vpack.c.bf16 %v7200_v13, %v7193_v11  ;;  %v7204_v45 = vpop.f32.mrb[27].mxu1  ;;  %v6546_v11 = vld [vmem:[%s8227_s4 + $0x1e0] sm:$0xff]   ;;  %v6547_v13 = vld [vmem:[%s8227_s4 + $0x1e8] sm:$0xff]  }
 0x26d   :  { %5799 = vmatpush3.bf16.msra.mxu0 %v6513_v10  ;;  %v959_v15 = vpack.c.bf16 %v7204_v45, %v7198_v52  ;;  %v6541_v52 = vld [vmem:[%s8227_s4 + $0x1b8] sm:$0xff]   ;;  %v6542_v45 = vld [vmem:[%s8227_s4 + $0x1c0] sm:$0xff]  }
 0x26e   :  { %5800 = vmatprep.subr.bf16.mxu0 %v6514_v12 }
 0x271   :  { %5801 = vmatpush3.bf16.msra.mxu0 %v6514_v12  ;;  %v7214_v21 = vpop.f32.mrb[28].mxu1 }
 0x272   :  { %5802 = vmatprep.subr.bf16.mxu0 %v6515_v51  ;;  %v7219_v22 = vpop.f32.mrb[29].mxu1 }
 0x273   :  { %v7221_v23 = vpop.f32.mrb[30].mxu1 }
 0x274   :  { %v962_v24 = vpack.c.bf16 %v7221_v23, %v7214_v21  ;;  %v7225_v25 = vpop.f32.mrb[31].mxu1  ;;  %v6554_v21 = vld [vmem:[%s8227_s4 + $0x220] sm:$0xff]   ;;  %v6555_v23 = vld [vmem:[%s8227_s4 + $0x228] sm:$0xff]  }
 0x275   :  { %5803 = vmatpush3.bf16.msra.mxu0 %v6515_v51  ;;  %v961_v27 = vpack.c.bf16 %v7225_v25, %v7219_v22  ;;  %v6527_v51 = vld [vmem:[%s8227_s4 + $0x148] sm:$0xff]   ;;  %v6549_v22 = vld [vmem:[%s8227_s4 + $0x1f8] sm:$0xff]   ;;  %v6550_v25 = vld [vmem:[%s8227_s4 + $0x200] sm:$0xff]  }
 0x276   :  { %5804 = vmatprep.subr.bf16.mxu0 %v6516_v16 }
 0x279   :  { %5805 = vmatpush3.bf16.msra.mxu0 %v6516_v16  ;;  %v7238_v32 = vpop.f32.mrb[32].mxu1 }
 0x27a   :  { %5806 = vmatprep.subr.bf16.mxu0 %v6517_v63  ;;  %v7240_v33 = vpop.f32.mrb[33].mxu1 }
 0x27b   :  { %v7245_v37 = vpop.f32.mrb[34].mxu1 }
 0x27c   :  { %v964_v38 = vpack.c.bf16 %v7245_v37, %v7238_v32  ;;  %v7249_v39 = vpop.f32.mrb[35].mxu1  ;;  %v6562_v32 = vld [vmem:[%s8227_s4 + $0x260] sm:$0xff]   ;;  %v6563_v37 = vld [vmem:[%s8227_s4 + $0x268] sm:$0xff]  }
 0x27d   :  { %5807 = vmatpush3.bf16.msra.mxu0 %v6517_v63  ;;  %v963_v40 = vpack.c.bf16 %v7249_v39, %v7240_v33  ;;  %v6528_v63 = vld [vmem:[%s8227_s4 + $0x150] sm:$0xff]   ;;  %v6557_v33 = vld [vmem:[%s8227_s4 + $0x238] sm:$0xff]   ;;  %v6558_v39 = vld [vmem:[%s8227_s4 + $0x240] sm:$0xff]  }
 0x27e   :  { %5812 = vmatprep.subr.bf16.mxu0 %v6518_v26 }
 0x280   :  { %5809 = vmatmul.mubr.bf16.vlgmr.msra.gmra.mrb[16].mxu0 %v954_v62 }
 0x281   :  { %5813 = vmatpush3.bf16.msra.mxu0 %v6518_v26  ;;  %5828 = vmatprep.mubr.bf16.mxu0 %v955_v36  ;;  %v7253_v41 = vpop.f32.mrb[36].mxu1 }
 0x282   :  { %5814 = vmatprep.subr.bf16.mxu0 %v6519_v28  ;;  %v7255_v42 = vpop.f32.mrb[37].mxu1 }
 0x283   :  { %v7260_v44 = vpop.f32.mrb[38].mxu1 }
 0x284   :  { %v966_v48 = vpack.c.bf16 %v7260_v44, %v7253_v41  ;;  %v7264_v49 = vpop.f32.mrb[39].mxu1  ;;  %v6570_v41 = vld [vmem:[%s8227_s4 + $0x2a0] sm:$0xff]   ;;  %v6571_v44 = vld [vmem:[%s8227_s4 + $0x2a8] sm:$0xff]  }
 0x285   :  { %5815 = vmatpush3.bf16.msra.mxu0 %v6519_v28  ;;  %v965_v50 = vpack.c.bf16 %v7264_v49, %v7255_v42  ;;  %v6565_v42 = vld [vmem:[%s8227_s4 + $0x278] sm:$0xff]   ;;  %v6566_v49 = vld [vmem:[%s8227_s4 + $0x280] sm:$0xff]  }
 0x286   :  { %5816 = vmatprep.subr.bf16.mxu0 %v6520_v30 }
 0x289   :  { %5817 = vmatpush3.bf16.msra.mxu0 %v6520_v30  ;;  %v7268_v53 = vpop.f32.mrb[40].mxu1 }
 0x28a   :  { %5818 = vmatprep.subr.bf16.mxu0 %v6521_v34  ;;  %v7270_v54 = vpop.f32.mrb[41].mxu1 }
 0x28b   :  { %v7275_v61 = vpop.f32.mrb[42].mxu1 }
 0x28c   :  { %v968_v57 = vpack.c.bf16 %v7275_v61, %v7268_v53  ;;  %v7279_v3 = vpop.f32.mrb[43].mxu1  ;;  %v6578_v53 = vld [vmem:[%s8227_s4 + $0x2e0] sm:$0xff]   ;;  %v6579_v61 = vld [vmem:[%s8227_s4 + $0x2e8] sm:$0xff]  }
 0x28d   :  { %5819 = vmatpush3.bf16.msra.mxu0 %v6521_v34  ;;  %v967_v56 = vpack.c.bf16 %v7279_v3, %v7270_v54  ;;  %v6573_v54 = vld [vmem:[%s8227_s4 + $0x2b8] sm:$0xff]   ;;  %v6574_v3 = vld [vmem:[%s8227_s4 + $0x2c0] sm:$0xff]  }
 0x28e   :  { %5820 = vmatprep.subr.bf16.mxu0 %v6522_v43 }
 0x291   :  { %5821 = vmatpush3.bf16.msra.mxu0 %v6522_v43  ;;  %v7283_v58 = vpop.f32.mrb[44].mxu1 }
 0x292   :  { %5822 = vmatprep.subr.bf16.mxu0 %v6523_v55  ;;  %v7288_v60 = vpop.f32.mrb[45].mxu1 }
 0x293   :  { %v7290_v62 = vpop.f32.mrb[46].mxu1 }
 0x294   :  { %v970_v0 = vpack.c.bf16 %v7290_v62, %v7283_v58  ;;  %v7294_v1 = vpop.f32.mrb[47].mxu1  ;;  %v6586_v58 = vld [vmem:[%s8227_s4 + $0x320] sm:$0xff]   ;;  %v6587_v62 = vld [vmem:[%s8227_s4 + $0x328] sm:$0xff]  }
 0x295   :  { %5823 = vmatpush3.bf16.msra.mxu0 %v6523_v55  ;;  %v969_v2 = vpack.c.bf16 %v7294_v1, %v7288_v60  ;;  %v6581_v60 = vld [vmem:[%s8227_s4 + $0x2f8] sm:$0xff]   ;;  %v6582_v1 = vld [vmem:[%s8227_s4 + $0x300] sm:$0xff]  }
 0x296   :  { %5824 = vmatprep.subr.bf16.mxu0 %v6524_v59 }
 0x299   :  { %5825 = vmatpush3.bf16.msra.mxu0 %v6524_v59  ;;  %v7301_v20 = vpop.f32.mrb[48].mxu1 }
 0x29a   :  { %5826 = vmatprep.subr.bf16.mxu0 %v6525_v18  ;;  %v7306_v36 = vpop.f32.mrb[49].mxu1 }
 0x29b   :  { %v7308_v29 = vpop.f32.mrb[50].mxu1 }
 0x29c   :  { %v972_v47 = vpack.c.bf16 %v7308_v29, %v7301_v20  ;;  %v7312_v10 = vpop.f32.mrb[51].mxu1  ;;  %v6594_v20 = vld [vmem:[%s8227_s4 + $0x360] sm:$0xff]   ;;  %v6595_v29 = vld [vmem:[%s8227_s4 + $0x368] sm:$0xff]  }
 0x29d   :  { %5827 = vmatpush3.bf16.msra.mxu0 %v6525_v18  ;;  %v971_v12 = vpack.c.bf16 %v7312_v10, %v7306_v36  ;;  %v6531_v18 = vld [vmem:[%s8227_s4 + $0x168] sm:$0xff]   ;;  %v6589_v36 = vld [vmem:[%s8227_s4 + $0x338] sm:$0xff]   ;;  %v6590_v10 = vld [vmem:[%s8227_s4 + $0x340] sm:$0xff]  }
 0x29e   :  { %5832 = vmatprep.subr.bf16.mxu0 %v6526_v31 }
 0x2a0   :  { %5829 = vmatmul.mubr.bf16.vlgmr.msra.gmra.mrb[16].mxu0 %v956_v19  ;;  %v6534_v19 = vld [vmem:[%s8227_s4 + $0x180] sm:$0xff]  }
 0x2a1   :  { %5833 = vmatpush3.bf16.msra.mxu0 %v6526_v31  ;;  %5848 = vmatprep.mubr.bf16.mxu0 %v957_v9  ;;  %v7325_v16 = vpop.f32.mrb[52].mxu1  ;;  %v6530_v9 = vld [vmem:[%s8227_s4 + $0x160] sm:$0xff]  }
 0x2a2   :  { %5834 = vmatprep.subr.bf16.mxu0 %v6527_v51  ;;  %v7330_v26 = vpop.f32.mrb[53].mxu1 }
 0x2a3   :  { %v7332_v28 = vpop.f32.mrb[54].mxu1 }
 0x2a4   :  { %v7336_v17 = vpop.f32.mrb[55].mxu1 }
 0x2a5   :  { %5835 = vmatpush3.bf16.msra.mxu0 %v6527_v51  ;;  %v6532_v51 = vld [vmem:[%s8227_s4 + $0x170] sm:$0xff]  }
 0x2a6   :  { %5836 = vmatprep.subr.bf16.mxu0 %v6528_v63 }
 0x2a9   :  { %5837 = vmatpush3.bf16.msra.mxu0 %v6528_v63  ;;  %v7343_v8 = vpop.f32.mrb[56].mxu1 }
 0x2aa   :  { %5838 = vmatprep.subr.bf16.mxu0 %v6529_v5  ;;  %v7348_v30 = vpop.f32.mrb[57].mxu1 }
 0x2ab   :  { %v7350_v34 = vpop.f32.mrb[58].mxu1 }
 0x2ac   :  { %v7354_v55 = vpop.f32.mrb[59].mxu1 }
 0x2ad   :  { %5839 = vmatpush3.bf16.msra.mxu0 %v6529_v5 }
 0x2ae   :  { %5840 = vmatprep.subr.bf16.mxu0 %v6530_v9 }
 0x2b1   :  { %5841 = vmatpush3.bf16.msra.mxu0 %v6530_v9  ;;  %v7361_v31 = vpop.f32.mrb[60].mxu1 }
 0x2b2   :  { %5842 = vmatprep.subr.bf16.mxu0 %v6531_v18  ;;  %v7366_v63 = vpop.f32.mrb[61].mxu1 }
 0x2b3   :  { %v7368_v43 = vpop.f32.mrb[62].mxu1 }
 0x2b4   :  { %v978_v5 = vpack.c.bf16 %v7368_v43, %v7361_v31  ;;  %v7372_v59 = vpop.f32.mrb[63].mxu1  ;;  %v6618_v43 = vld [vmem:[%s8230_s7 + $0x48] sm:$0xff]   ;;  %v6620_v31 = vld [vmem:[%s8230_s7 + $0x50] sm:$0xff]  }
 0x2b5   :  { %5843 = vmatpush3.bf16.msra.mxu0 %v6531_v18  ;;  %v977_v9 = vpack.c.bf16 %v7372_v59, %v7366_v63  ;;  %v6535_v18 = vld [vmem:[%s8227_s4 + $0x188] sm:$0xff]   ;;  %v6612_v59 = vld [vmem:[%s8227_s4 + $0x3f0] sm:$0xff]   ;;  %v6613_v63 = vld [vmem:[%s8227_s4 + $0x3f8] sm:$0xff]  }
 0x2b6   :  { %5844 = vmatprep.subr.bf16.mxu0 %v6532_v51 }
 0x2b9   :  { %5845 = vmatpush3.bf16.msra.mxu0 %v6532_v51  ;;  %v6536_v51 = vld [vmem:[%s8227_s4 + $0x190] sm:$0xff]  }
 0x2ba   :  { %5846 = vmatprep.subr.bf16.mxu0 %v6533_v4 }
 0x2bd   :  { %5847 = vmatpush3.bf16.msra.mxu0 %v6533_v4  ;;  %v6537_v4 = vld [vmem:[%s8227_s4 + $0x198] sm:$0xff]  }
 0x2be   :  { %5852 = vmatprep.subr.bf16.mxu0 %v6534_v19 }
 0x2c0   :  { %5849 = vmatmul.mubr.bf16.vlgmr.msra.gmra.mrb[16].mxu0 %v958_v7  ;;  %v6540_v7 = vld [vmem:[%s8227_s4 + $0x1b0] sm:$0xff]  }
 0x2c1   :  { %5853 = vmatpush3.bf16.msra.mxu0 %v6534_v19  ;;  %5868 = vmatprep.mubr.bf16.mxu0 %v959_v15  ;;  %v6543_v15 = vld [vmem:[%s8227_s4 + $0x1c8] sm:$0xff]   ;;  %v6544_v19 = vld [vmem:[%s8227_s4 + $0x1d0] sm:$0xff]  }
 0x2c2   :  { %5854 = vmatprep.subr.bf16.mxu0 %v6535_v18 }
 0x2c5   :  { %5855 = vmatpush3.bf16.msra.mxu0 %v6535_v18  ;;  %v6545_v18 = vld [vmem:[%s8227_s4 + $0x1d8] sm:$0xff]  }
 0x2c6   :  { %5856 = vmatprep.subr.bf16.mxu0 %v6536_v51 }
 0x2c9   :  { %5857 = vmatpush3.bf16.msra.mxu0 %v6536_v51  ;;  %v6552_v51 = vld [vmem:[%s8227_s4 + $0x210] sm:$0xff]  }
 0x2ca   :  { %5858 = vmatprep.subr.bf16.mxu0 %v6537_v4 }
 0x2cd   :  { %5859 = vmatpush3.bf16.msra.mxu0 %v6537_v4  ;;  %v6553_v4 = vld [vmem:[%s8227_s4 + $0x218] sm:$0xff]  }
 0x2ce   :  { %5860 = vmatprep.subr.bf16.mxu0 %v6538_v35 }
 0x2d1   :  { %5861 = vmatpush3.bf16.msra.mxu0 %v6538_v35 }
 0x2d2   :  { %5862 = vmatprep.subr.bf16.mxu0 %v6539_v6 }
 0x2d5   :  { %5863 = vmatpush3.bf16.msra.mxu0 %v6539_v6 }
 0x2d6   :  { %5864 = vmatprep.subr.bf16.mxu0 %v6540_v7 }
 0x2d9   :  { %5865 = vmatpush3.bf16.msra.mxu0 %v6540_v7  ;;  %v6559_v7 = vld [vmem:[%s8227_s4 + $0x248] sm:$0xff]  }
 0x2da   :  { %5866 = vmatprep.subr.bf16.mxu0 %v6541_v52 }
 0x2dd   :  { %5867 = vmatpush3.bf16.msra.mxu0 %v6541_v52 }
 0x2de   :  { %5872 = vmatprep.subr.bf16.mxu0 %v6542_v45 }
 0x2e0   :  { %5869 = vmatmul.mubr.bf16.vlgmr.msra.gmra.mrb[16].mxu0 %v960_v14  ;;  %v6548_v14 = vld [vmem:[%s8227_s4 + $0x1f0] sm:$0xff]  }
 0x2e1   :  { %5873 = vmatpush3.bf16.msra.mxu0 %v6542_v45  ;;  %5888 = vmatprep.mubr.bf16.mxu0 %v961_v27  ;;  %v6551_v27 = vld [vmem:[%s8227_s4 + $0x208] sm:$0xff]   ;;  %v6560_v45 = vld [vmem:[%s8227_s4 + $0x250] sm:$0xff]  }
 0x2e2   :  { %5874 = vmatprep.subr.bf16.mxu0 %v6543_v15 }
 0x2e5   :  { %5875 = vmatpush3.bf16.msra.mxu0 %v6543_v15  ;;  %v6561_v15 = vld [vmem:[%s8227_s4 + $0x258] sm:$0xff]  }
 0x2e6   :  { %5876 = vmatprep.subr.bf16.mxu0 %v6544_v19 }
 0x2e9   :  { %5877 = vmatpush3.bf16.msra.mxu0 %v6544_v19  ;;  %v6568_v19 = vld [vmem:[%s8227_s4 + $0x290] sm:$0xff]  }
 0x2ea   :  { %5878 = vmatprep.subr.bf16.mxu0 %v6545_v18 }
 0x2ed   :  { %5879 = vmatpush3.bf16.msra.mxu0 %v6545_v18  ;;  %v6569_v18 = vld [vmem:[%s8227_s4 + $0x298] sm:$0xff]  }
 0x2ee   :  { %5880 = vmatprep.subr.bf16.mxu0 %v6546_v11 }
 0x2f1   :  { %5881 = vmatpush3.bf16.msra.mxu0 %v6546_v11  ;;  %v6576_v11 = vld [vmem:[%s8227_s4 + $0x2d0] sm:$0xff]  }
 0x2f2   :  { %5882 = vmatprep.subr.bf16.mxu0 %v6547_v13 }
 0x2f5   :  { %5883 = vmatpush3.bf16.msra.mxu0 %v6547_v13  ;;  %v6577_v13 = vld [vmem:[%s8227_s4 + $0x2d8] sm:$0xff]  }
 0x2f6   :  { %5884 = vmatprep.subr.bf16.mxu0 %v6548_v14 }
 0x2f9   :  { %5885 = vmatpush3.bf16.msra.mxu0 %v6548_v14  ;;  %v6584_v14 = vld [vmem:[%s8227_s4 + $0x310] sm:$0xff]  }
 0x2fa   :  { %5886 = vmatprep.subr.bf16.mxu0 %v6549_v22 }
 0x2fd   :  { %5887 = vmatpush3.bf16.msra.mxu0 %v6549_v22  ;;  %v6585_v22 = vld [vmem:[%s8227_s4 + $0x318] sm:$0xff]  }
 0x2fe   :  { %5892 = vmatprep.subr.bf16.mxu0 %v6550_v25 }
 0x300   :  { %5889 = vmatmul.mubr.bf16.vlgmr.msra.gmra.mrb[16].mxu0 %v962_v24  ;;  %v6556_v24 = vld [vmem:[%s8227_s4 + $0x230] sm:$0xff]  }
 0x301   :  { %5893 = vmatpush3.bf16.msra.mxu0 %v6550_v25  ;;  %5908 = vmatprep.mubr.bf16.mxu0 %v963_v40  ;;  %v8236_v25 = vpack.c.bf16 %v7336_v17, %v7330_v26  ;;  %v6597_v26 = vld [vmem:[%s8227_s4 + $0x378] sm:$0xff]   ;;  %v6598_v17 = vld [vmem:[%s8227_s4 + $0x380] sm:$0xff]  }
 0x302   :  { %5894 = vmatprep.subr.bf16.mxu0 %v6551_v27 }
 0x305   :  { %5895 = vmatpush3.bf16.msra.mxu0 %v6551_v27  ;;  %v6592_v27 = vld [vmem:[%s8227_s4 + $0x350] sm:$0xff]  }
 0x306   :  { %5896 = vmatprep.subr.bf16.mxu0 %v6552_v51 }
 0x309   :  { %5897 = vmatpush3.bf16.msra.mxu0 %v6552_v51  ;;  %v6593_v51 = vld [vmem:[%s8227_s4 + $0x358] sm:$0xff]  }
 0x30a   :  { %5898 = vmatprep.subr.bf16.mxu0 %v6553_v4 }
 0x30d   :  { %5899 = vmatpush3.bf16.msra.mxu0 %v6553_v4  ;;  %v6599_v4 = vld [vmem:[%s8227_s4 + $0x388] sm:$0xff]  }
 0x30e   :  { %5900 = vmatprep.subr.bf16.mxu0 %v6554_v21 }
 0x311   :  { %5901 = vmatpush3.bf16.msra.mxu0 %v6554_v21  ;;  %v8237_v21 = vpack.c.bf16 %v7332_v28, %v7325_v16  ;;  %v6602_v16 = vld [vmem:[%s8227_s4 + $0x3a0] sm:$0xff]   ;;  %v6603_v28 = vld [vmem:[%s8227_s4 + $0x3a8] sm:$0xff]  }
 0x312   :  { %5902 = vmatprep.subr.bf16.mxu0 %v6555_v23 }
 0x315   :  { %5903 = vmatpush3.bf16.msra.mxu0 %v6555_v23  ;;  %v8238_v23 = vpack.c.bf16 %v7354_v55, %v7348_v30  ;;  %v6604_v30 = vld [vmem:[%s8227_s4 + $0x3b0] sm:$0xff]   ;;  %v6605_v55 = vld [vmem:[%s8227_s4 + $0x3b8] sm:$0xff]  }
 0x316   :  { %5904 = vmatprep.subr.bf16.mxu0 %v6556_v24 }
 0x319   :  { %5905 = vmatpush3.bf16.msra.mxu0 %v6556_v24  ;;  %v6600_v24 = vld [vmem:[%s8227_s4 + $0x390] sm:$0xff]  }
 0x31a   :  { %5906 = vmatprep.subr.bf16.mxu0 %v6557_v33 }
 0x31b   :  { %v7472_v40 = vpop.f32.mrb[64].mxu1 }
 0x31c   :  { %v7474_v35 = vpop.f32.mrb[65].mxu1 }
 0x31d   :  { %5907 = vmatpush3.bf16.msra.mxu0 %v6557_v33  ;;  %v7476_v6 = vpop.f32.mrb[66].mxu1  ;;  %v6601_v33 = vld [vmem:[%s8227_s4 + $0x398] sm:$0xff]  }
 0x31e   :  { %5912 = vmatprep.subr.bf16.mxu0 %v6558_v39  ;;  %v7481_v52 = vpop.f32.mrb[67].mxu1 }
 0x320   :  { %5909 = vmatmul.mubr.bf16.vlgmr.msra.gmra.mrb[16].mxu0 %v964_v38  ;;  %v6564_v38 = vld [vmem:[%s8227_s4 + $0x270] sm:$0xff]  }
 0x321   :  { %5913 = vmatpush3.bf16.msra.mxu0 %v6558_v39  ;;  %5928 = vmatprep.mubr.bf16.mxu0 %v965_v50  ;;  %v6567_v50 = vld [vmem:[%s8227_s4 + $0x288] sm:$0xff]   ;;  %v6606_v39 = vld [vmem:[%s8227_s4 + $0x3c0] sm:$0xff]  }
 0x322   :  { %5914 = vmatprep.subr.bf16.mxu0 %v6559_v7 }
 0x325   :  { %5915 = vmatpush3.bf16.msra.mxu0 %v6559_v7  ;;  %v6607_v7 = vld [vmem:[%s8227_s4 + $0x3c8] sm:$0xff]  }
 0x326   :  { %5916 = vmatprep.subr.bf16.mxu0 %v6560_v45 }
 0x329   :  { %5917 = vmatpush3.bf16.msra.mxu0 %v6560_v45  ;;  %v8239_v45 = vpack.c.bf16 %v7350_v34, %v7343_v8  ;;  %v6610_v8 = vld [vmem:[%s8227_s4 + $0x3e0] sm:$0xff]   ;;  %v6611_v34 = vld [vmem:[%s8227_s4 + $0x3e8] sm:$0xff]  }
 0x32a   :  { %5918 = vmatprep.subr.bf16.mxu0 %v6561_v15 }
 0x32d   :  { %5919 = vmatpush3.bf16.msra.mxu0 %v6561_v15  ;;  %v6608_v15 = vld [vmem:[%s8227_s4 + $0x3d0] sm:$0xff]  }
 0x32e   :  { %5920 = vmatprep.subr.bf16.mxu0 %v6562_v32 }
 0x331   :  { %5921 = vmatpush3.bf16.msra.mxu0 %v6562_v32  ;;  %v6609_v32 = vld [vmem:[%s8227_s4 + $0x3d8] sm:$0xff]  }
 0x332   :  { %5922 = vmatprep.subr.bf16.mxu0 %v6563_v37 }
 0x335   :  { %5923 = vmatpush3.bf16.msra.mxu0 %v6563_v37  ;;  %v6617_v37 = vld [vmem:[%s8230_s7 + $0x40] sm:$0xff]  }
 0x336   :  { %5924 = vmatprep.subr.bf16.mxu0 %v6564_v38 }
 0x339   :  { %5925 = vmatpush3.bf16.msra.mxu0 %v6564_v38  ;;  %v6622_v38 = vld [vmem:[%s8230_s7 + $0x60] sm:$0xff]  }
 0x33a   :  { %5926 = vmatprep.subr.bf16.mxu0 %v6565_v42 }
 0x33d   :  { %5927 = vmatpush3.bf16.msra.mxu0 %v6565_v42  ;;  %v6623_v42 = vld [vmem:[%s8230_s7 + $0x68] sm:$0xff]  }
 0x33e   :  { %5932 = vmatprep.subr.bf16.mxu0 %v6566_v49 }
 0x340   :  { %5929 = vmatmul.mubr.bf16.vlgmr.msra.gmra.mrb[16].mxu0 %v966_v48  ;;  %v6572_v48 = vld [vmem:[%s8227_s4 + $0x2b0] sm:$0xff]  }
 0x341   :  { %5933 = vmatpush3.bf16.msra.mxu0 %v6566_v49  ;;  %5948 = vmatprep.mubr.bf16.mxu0 %v967_v56  ;;  %v6575_v56 = vld [vmem:[%s8227_s4 + $0x2c8] sm:$0xff]   ;;  %v6624_v49 = vld [vmem:[%s8230_s7 + $0x70] sm:$0xff]  }
 0x342   :  { %5934 = vmatprep.subr.bf16.mxu0 %v6567_v50 }
 0x345   :  { %5935 = vmatpush3.bf16.msra.mxu0 %v6567_v50 }
 0x346   :  { %5936 = vmatprep.subr.bf16.mxu0 %v6568_v19 }
 0x349   :  { %5937 = vmatpush3.bf16.msra.mxu0 %v6568_v19 }
 0x34a   :  { %5938 = vmatprep.subr.bf16.mxu0 %v6569_v18 }
 0x34d   :  { %5939 = vmatpush3.bf16.msra.mxu0 %v6569_v18 }
 0x34e   :  { %5940 = vmatprep.subr.bf16.mxu0 %v6570_v41 }
 0x351   :  { %5941 = vmatpush3.bf16.msra.mxu0 %v6570_v41 }
 0x352   :  { %5942 = vmatprep.subr.bf16.mxu0 %v6571_v44 }
 0x355   :  { %5943 = vmatpush3.bf16.msra.mxu0 %v6571_v44 }
 0x356   :  { %5944 = vmatprep.subr.bf16.mxu0 %v6572_v48 }
 0x359   :  { %5945 = vmatpush3.bf16.msra.mxu0 %v6572_v48 }
 0x35a   :  { %5946 = vmatprep.subr.bf16.mxu0 %v6573_v54 }
 0x35d   :  { %5947 = vmatpush3.bf16.msra.mxu0 %v6573_v54 }
 0x35e   :  { %5952 = vmatprep.subr.bf16.mxu0 %v6574_v3 }
 0x360   :  { %5949 = vmatmul.mubr.bf16.vlgmr.msra.gmra.mrb[16].mxu0 %v968_v57  ;;  %v6580_v57 = vld [vmem:[%s8227_s4 + $0x2f0] sm:$0xff]  }
 0x361   :  { %5953 = vmatpush3.bf16.msra.mxu0 %v6574_v3  ;;  %5968 = vmatprep.mubr.bf16.mxu0 %v969_v2  ;;  %v6583_v2 = vld [vmem:[%s8227_s4 + $0x308] sm:$0xff]  }
 0x362   :  { %5954 = vmatprep.subr.bf16.mxu0 %v6575_v56 }
 0x365   :  { %5955 = vmatpush3.bf16.msra.mxu0 %v6575_v56 }
 0x366   :  { %5956 = vmatprep.subr.bf16.mxu0 %v6576_v11 }
 0x369   :  { %5957 = vmatpush3.bf16.msra.mxu0 %v6576_v11 }
 0x36a   :  { %5958 = vmatprep.subr.bf16.mxu0 %v6577_v13 }
 0x36d   :  { %5959 = vmatpush3.bf16.msra.mxu0 %v6577_v13 }
 0x36e   :  { %5960 = vmatprep.subr.bf16.mxu0 %v6578_v53 }
 0x371   :  { %5961 = vmatpush3.bf16.msra.mxu0 %v6578_v53 }
 0x372   :  { %5962 = vmatprep.subr.bf16.mxu0 %v6579_v61 }
 0x375   :  { %5963 = vmatpush3.bf16.msra.mxu0 %v6579_v61 }
 0x376   :  { %5964 = vmatprep.subr.bf16.mxu0 %v6580_v57 }
 0x379   :  { %5965 = vmatpush3.bf16.msra.mxu0 %v6580_v57 }
 0x37a   :  { %5966 = vmatprep.subr.bf16.mxu0 %v6581_v60 }
 0x37d   :  { %5967 = vmatpush3.bf16.msra.mxu0 %v6581_v60 }
 0x37e   :  { %5972 = vmatprep.subr.bf16.mxu0 %v6582_v1 }
 0x380   :  { %5969 = vmatmul.mubr.bf16.vlgmr.msra.gmra.mrb[16].mxu0 %v970_v0  ;;  %v6588_v0 = vld [vmem:[%s8227_s4 + $0x330] sm:$0xff]  }
 0x381   :  { %5973 = vmatpush3.bf16.msra.mxu0 %v6582_v1  ;;  %5988 = vmatprep.mubr.bf16.mxu0 %v971_v12  ;;  %v6591_v12 = vld [vmem:[%s8227_s4 + $0x348] sm:$0xff]  }
 0x382   :  { %5974 = vmatprep.subr.bf16.mxu0 %v6583_v2 }
 0x385   :  { %5975 = vmatpush3.bf16.msra.mxu0 %v6583_v2 }
 0x386   :  { %5976 = vmatprep.subr.bf16.mxu0 %v6584_v14 }
 0x389   :  { %5977 = vmatpush3.bf16.msra.mxu0 %v6584_v14 }
 0x38a   :  { %5978 = vmatprep.subr.bf16.mxu0 %v6585_v22 }
 0x38d   :  { %5979 = vmatpush3.bf16.msra.mxu0 %v6585_v22 }
 0x38e   :  { %5980 = vmatprep.subr.bf16.mxu0 %v6586_v58 }
 0x391   :  { %5981 = vmatpush3.bf16.msra.mxu0 %v6586_v58 }
 0x392   :  { %5982 = vmatprep.subr.bf16.mxu0 %v6587_v62 }
 0x395   :  { %5983 = vmatpush3.bf16.msra.mxu0 %v6587_v62 }
 0x396   :  { %5984 = vmatprep.subr.bf16.mxu0 %v6588_v0 }
 0x399   :  { %5985 = vmatpush3.bf16.msra.mxu0 %v6588_v0 }
 0x39a   :  { %5986 = vmatprep.subr.bf16.mxu0 %v6589_v36 }
 0x39d   :  { %5987 = vmatpush3.bf16.msra.mxu0 %v6589_v36 }
 0x39e   :  { %5992 = vmatprep.subr.bf16.mxu0 %v6590_v10 }
 0x3a0   :  { %5989 = vmatmul.mubr.bf16.vlgmr.msra.gmra.mrb[16].mxu0 %v972_v47  ;;  %v6596_v47 = vld [vmem:[%s8227_s4 + $0x370] sm:$0xff]   ;;  %s6757_s4 = smov [#allocation2]  }
 0x3a1   :  { %5993 = vmatpush3.bf16.msra.mxu0 %v6590_v10  ;;  %6008 = vmatprep.mubr.bf16.mxu0 %v8236_v25  ;;  %s4558_s15 = sshll.u32 %s6757_s4, 4  ;;  %s4559_s15 = int_to_ptr.vmem [resolvable:$true] %s4558_s15 }
 0x3a2   :  { %5994 = vmatprep.subr.bf16.mxu0 %v6591_v12  ;;  %s6731_s16 = scalar_lea.vmem %s4559_s15, 32  ;;  %p6736_p1 = scmp.lt.s32.totalorder %s4559_s15, %s4559_s15 }
 0x3a3   :  { %p6732_p0 = scmp.ne.s32.totalorder %s4559_s15, %s6731_s16  ;;  %p6737_p2 = scmp.lt.s32.totalorder %s6731_s16, %s6731_s16 }
 0x3a5   :  { %5995 = vmatpush3.bf16.msra.mxu0 %v6591_v12  ;;  %p6738_p3 = por %p6737_p2, %p6736_p1 }
 0x3a6   :  { %5996 = vmatprep.subr.bf16.mxu0 %v6592_v27 }
 0x3a7   :  { %p6739_p4 = pnand %p6738_p3, %p6732_p0 }
 0x3a9   :  { %5997 = vmatpush3.bf16.msra.mxu0 %v6592_v27 }
 0x3aa   :  { %5998 = vmatprep.subr.bf16.mxu0 %v6593_v51 }
 0x3ad   :  { %5999 = vmatpush3.bf16.msra.mxu0 %v6593_v51 }
 0x3ae   :  { %6000 = vmatprep.subr.bf16.mxu0 %v6594_v20 }
 0x3b1   :  { %6001 = vmatpush3.bf16.msra.mxu0 %v6594_v20 }
 0x3b2   :  { %6002 = vmatprep.subr.bf16.mxu0 %v6595_v29 }
 0x3b5   :  { %6003 = vmatpush3.bf16.msra.mxu0 %v6595_v29 }
 0x3b6   :  { %6004 = vmatprep.subr.bf16.mxu0 %v6596_v47 }
 0x3b9   :  { %6005 = vmatpush3.bf16.msra.mxu0 %v6596_v47 }
 0x3ba   :  { %6006 = vmatprep.subr.bf16.mxu0 %v6597_v26 }
 0x3bd   :  { %6007 = vmatpush3.bf16.msra.mxu0 %v6597_v26 }
 0x3be   :  { %6012 = vmatprep.subr.bf16.mxu0 %v6598_v17 }
 0x3c0   :  { %6009 = vmatmul.mubr.bf16.vlgmr.msra.gmra.mrb[16].mxu0 %v8237_v21 }
 0x3c1   :  { %6013 = vmatpush3.bf16.msra.mxu0 %v6598_v17  ;;  %6028 = vmatprep.mubr.bf16.mxu0 %v8238_v23  ;;  %v2885_v17 = vld [vmem:[%s8228_s5] sm:$0x1]  ;;  %v2889_v23 = vld [vmem:[%s8228_s5 + $0x1] sm:$0x1] }
 0x3c2   :  { %6014 = vmatprep.subr.bf16.mxu0 %v6599_v4 }
 0x3c5   :  { %6015 = vmatpush3.bf16.msra.mxu0 %v6599_v4 }
 0x3c6   :  { %6016 = vmatprep.subr.bf16.mxu0 %v6600_v24 }
 0x3c9   :  { %6017 = vmatpush3.bf16.msra.mxu0 %v6600_v24 }
 0x3ca   :  { %6018 = vmatprep.subr.bf16.mxu0 %v6601_v33 }
 0x3cd   :  { %6019 = vmatpush3.bf16.msra.mxu0 %v6601_v33 }
 0x3ce   :  { %6020 = vmatprep.subr.bf16.mxu0 %v6602_v16 }
 0x3d1   :  { %6021 = vmatpush3.bf16.msra.mxu0 %v6602_v16 }
 0x3d2   :  { %6022 = vmatprep.subr.bf16.mxu0 %v6603_v28 }
 0x3d5   :  { %6023 = vmatpush3.bf16.msra.mxu0 %v6603_v28 }
 0x3d6   :  { %6024 = vmatprep.subr.bf16.mxu0 %v6604_v30 }
 0x3d9   :  { %6025 = vmatpush3.bf16.msra.mxu0 %v6604_v30 }
 0x3da   :  { %6026 = vmatprep.subr.bf16.mxu0 %v6605_v55 }
 0x3dd   :  { %6027 = vmatpush3.bf16.msra.mxu0 %v6605_v55 }
 0x3de   :  { %6032 = vmatprep.subr.bf16.mxu0 %v6606_v39 }
 0x3e0   :  { %6029 = vmatmul.mubr.bf16.vlgmr.msra.gmra.mrb[16].mxu0 %v8239_v45 }
 0x3e1   :  { %6033 = vmatpush3.bf16.msra.mxu0 %v6606_v39  ;;  %6048 = vmatprep.mubr.bf16.mxu0 %v977_v9  ;;  %v6755_v9 = vmov 0.0  }
 0x3e2   :  { %6034 = vmatprep.subr.bf16.mxu0 %v6607_v7  ;;  %6076 = vmatprep.subr.bf16.mxu1 %v6755_v9 }
 0x3e3   :  { %6092 = vmatprep.mubr.msk.bf16.mxu1 %vm6756_vm0, %v6755_v9  ;;  %6077 = vmatpush3.bf16.msra.mxu1 %v6617_v37 }
 0x3e4   :  { %6078 = vmatprep.subr.bf16.mxu1 %v6755_v9 }
 0x3e5   :  { %6035 = vmatpush3.bf16.msra.mxu0 %v6607_v7 }
 0x3e6   :  { %6036 = vmatprep.subr.bf16.mxu0 %v6608_v15 }
 0x3e7   :  { %6079 = vmatpush3.bf16.msra.mxu1 %v6618_v43 }
 0x3e8   :  { %6080 = vmatprep.subr.bf16.mxu1 %v6755_v9 }
 0x3e9   :  { %6037 = vmatpush3.bf16.msra.mxu0 %v6608_v15 }
 0x3ea   :  { %6038 = vmatprep.subr.bf16.mxu0 %v6609_v32 }
 0x3eb   :  { %6081 = vmatpush3.bf16.msra.mxu1 %v6620_v31 }
 0x3ec   :  { %6082 = vmatprep.subr.bf16.mxu1 %v6755_v9 }
 0x3ed   :  { %6039 = vmatpush3.bf16.msra.mxu0 %v6609_v32 }
 0x3ee   :  { %6040 = vmatprep.subr.bf16.mxu0 %v6610_v8 }
 0x3f1   :  { %6041 = vmatpush3.bf16.msra.mxu0 %v6610_v8 }
 0x3f2   :  { %6042 = vmatprep.subr.bf16.mxu0 %v6611_v34 }
 0x3f5   :  { %6043 = vmatpush3.bf16.msra.mxu0 %v6611_v34 }
 0x3f6   :  { %6044 = vmatprep.subr.bf16.mxu0 %v6612_v59 }
 0x3f9   :  { %6045 = vmatpush3.bf16.msra.mxu0 %v6612_v59 }
 0x3fa   :  { %6046 = vmatprep.subr.bf16.mxu0 %v6613_v63 }
 0x3fd   :  { %6047 = vmatpush3.bf16.msra.mxu0 %v6613_v63 }
 0x3fe   :  { %6052 = vmatprep.subr.bf16.mxu0 %v6755_v9 }
 0x400   :  { %6049 = vmatmul.mubr.bf16.vlgmr.msra.gmra.mrb[16].mxu0 %v978_v5  ;;  %v6621_v5 = vld [vmem:[%s8230_s7 + $0x58] sm:$0xff]  }
 0x401   :  { %6056 = vmatprep.mubr.msk.bf16.mxu0 %vm6756_vm0, %v6755_v9  ;;  %6083 = vmatpush3.bf16.msra.mxu1 %v6621_v5  ;;  %v6614_v5 = vld [vmem:[%s8229_s6] sm:$0xff]  }
 0x402   :  { %6084 = vmatprep.subr.bf16.mxu1 %v6755_v9 }
 0x405   :  { %6085 = vmatpush3.bf16.msra.mxu1 %v6622_v38  ;;  %v6615_v38 = vld [vmem:[%s8229_s6 + $0x8] sm:$0xff]  }
 0x406   :  { %6086 = vmatprep.subr.bf16.mxu1 %v6755_v9 }
 0x409   :  { %6087 = vmatpush3.bf16.msra.mxu1 %v6623_v42  ;;  %v6616_v42 = vld [vmem:[%s8229_s6 + $0x10] sm:$0xff]  }
 0x40a   :  { %6088 = vmatprep.subr.bf16.mxu1 %v6755_v9 }
 0x40d   :  { %6089 = vmatpush3.bf16.msra.mxu1 %v6624_v49  ;;  %v6619_v49 = vld [vmem:[%s8229_s6 + $0x18] sm:$0xff]  }
 0x40e   :  { %6090 = vmatprep.subr.bf16.mxu1 %v6755_v9 }
 0x4d3   :  { %v6050_v50 = vpop.f32.mrb[16].mxu0 }
 0x4d4   :  { %v6342_v19 = vadd.f32 %v6050_v50, %v7472_v40  ;;  %v2839_v18 = vpop.f32.mrb[17].mxu0  ;;  %v6625_v50 = vld [vmem:[%s8230_s7 + $0x78] sm:$0xff]  }
 0x4d5   :  { %v6343_v41 = vadd.f32 %v2839_v18, %v7474_v35  ;;  %v6051_v44 = vpop.f32.mrb[18].mxu0  ;;  %6091 = vmatpush3.bf16.msra.mxu1 %v6625_v50  ;;  %v6661_v50 = vld [vmem:[%s8230_s7 + $0x150] sm:$0xff]  }
 0x4d6   :  { %v6344_v48 = vadd.f32 %v6051_v44, %v7476_v6  ;;  %v2842_v54 = vpop.f32.mrb[19].mxu0  ;;  %v2870_v53 = vmul.f32 %v6342_v19, %v6342_v19  ;;  %6096 = vmatprep.subr.bf16.mxu1 %v6755_v9 }
 0x4d7   :  { %v6345_v3 = vadd.f32 %v2842_v54, %v7481_v52  ;;  %v2868_v56 = vmul.f32 %v6343_v41, %v6343_v41 }
 0x4d8   :  { %v2871_v60 = vmul.f32 %v6344_v48, %v6344_v48 }
 0x4d9   :  { %v2858_v11 = vadd.f32 %v6345_v3, %v6343_v41  ;;  %v2869_v13 = vmul.f32 %v6345_v3, %v6345_v3 }
 0x4db   :  { %v2859_v61 = vadd.f32 %v6342_v19, %v2858_v11  ;;  %v2872_v57 = vadd.f32 %v2869_v13, %v2868_v56  ;;  %v6627_v11 = vld [vmem:[%s8230_s7 + $0x8] sm:$0xff]  }
 0x4dd   :  { %v2860_v1 = vadd.f32 %v6344_v48, %v2859_v61  ;;  %v2873_v2 = vadd.f32 %v2872_v57, %v2870_v53 }
 0x4df   :  { %v2861_v14 = vrot.slane %v2860_v1, 4  ;;  %v2874_v40 = vadd.f32 %v2873_v2, %v2871_v60  ;;  %v6629_v2 = vld [vmem:[%s8230_s7 + $0x18] sm:$0xff]  }
 0x4e1   :  { %v2862_v22 = vadd.f32 %v2861_v14, %v2860_v1  ;;  %v2875_v58 = vrot.slane %v2874_v40, 4  ;;  %v6628_v1 = vld [vmem:[%s8230_s7 + $0x10] sm:$0xff]  }
 0x4e3   :  { %v2863_v35 = vrot.slane %v2862_v22, 2  ;;  %v2876_v62 = vadd.f32 %v2875_v58, %v2874_v40 }
 0x4e5   :  { %v2864_v0 = vadd.f32 %v2863_v35, %v2862_v22  ;;  %v2877_v6 = vrot.slane %v2876_v62, 2 }
 0x4e7   :  { %v2865_v36 = vrot.slane %v2864_v0, 1  ;;  %v2878_v10 = vadd.f32 %v2877_v6, %v2876_v62  ;;  %v6630_v62 = vld [vmem:[%s8230_s7 + $0x20] sm:$0xff]   ;;  %v6632_v6 = vld [vmem:[%s8230_s7 + $0x30] sm:$0xff]  }
 0x4e9   :  { %v2866_v52 = vadd.f32 %v2865_v36, %v2864_v0  ;;  %v2879_v12 = vrot.slane %v2878_v10, 1  ;;  %v6631_v0 = vld [vmem:[%s8230_s7 + $0x28] sm:$0xff]   ;;  %v6633_v36 = vld [vmem:[%s8230_s7 + $0x38] sm:$0xff]  }
 0x4eb   :  { %v2867_v25 = vmul.f32 0.03125, %v2866_v52  ;;  %v2880_v27 = vadd.f32 %v2879_v12, %v2878_v10  ;;  %v6634_v10 = vld [vmem:[%s8230_s7 + $0x80] sm:$0xff]   ;;  %v6635_v52 = vld [vmem:[%s8230_s7 + $0x88] sm:$0xff]   ;;  %v6637_v12 = vld [vmem:[%s8230_s7 + $0x90] sm:$0xff]  }
 0x4ed   :  { %v2881_v51 = vmul.f32 0.03125, %v2880_v27  ;;  %v2882_v20 = vmul.f32 %v2867_v25, %v2867_v25  ;;  %v6639_v27 = vld [vmem:[%s8230_s7 + $0xa0] sm:$0xff]  }
 0x4ef   :  { %v2883_v29 = vsub.f32 %v2881_v51, %v2882_v20  ;;  %v6640_v51 = vld [vmem:[%s8230_s7 + $0xa8] sm:$0xff]   ;;  %v6641_v20 = vld [vmem:[%s8230_s7 + $0xb0] sm:$0xff]  }
 0x4f1   :  { %v2884_v47 = vmax.f32 %v2883_v29, 0.0 }
 0x4f3   :  { %v2886_v26 = vadd.f32 1e-05, %v2884_v47 }
 0x4f5   :  { %6727 = vrsqrt.f32 %v2886_v26  ;;  %v6642_v26 = vld [vmem:[%s8230_s7 + $0xb8] sm:$0xff]  }
 0x4ff   :  { %v6728_v4 = vpop.eup %6727 }
 0x500   :  { %v2888_v21 = vmul.f32 %v6728_v4, %v2885_v17 }
 0x502   :  { %v2890_v24 = vmul.f32 %v2888_v21, %v2867_v25  ;;  %v2895_v33 = vrot.slane %v2888_v21, %v6955_v46  ;;  %v6638_v25 = vld [vmem:[%s8230_s7 + $0x98] sm:$0xff]  }
 0x504   :  { %v2891_v16 = vsub.f32 %v2889_v23, %v2890_v24  ;;  %v2897_v28 = vmul.f32 %v6345_v3, %v2895_v33  ;;  %v2896_v30 = vmul.f32 %v6343_v41, %v2895_v33  ;;  %v2898_v55 = vmul.f32 %v6342_v19, %v2895_v33  ;;  %v6636_v19 = vld [vmem:[%s8229_s6 + $0x20] ss:$0 sps:$4 sm:$0xff]   ;;  %v6644_v24 = vld [vmem:[%s8230_s7 + $0xc8] sm:$0xff]  }
 0x505   :  { %v2899_v39 = vmul.f32 %v6344_v48, %v2895_v33  ;;  %v6626_v3 = vld [vmem:[%s8230_s7] sm:$0xff]   ;;  %v6645_v33 = vld [vmem:[%s8230_s7 + $0xd0] sm:$0xff]  }
 0x506   :  { %v2903_v7 = vrot.slane %v2891_v16, %v6955_v46  ;;  %v6643_v23 = vld [vmem:[%s8230_s7 + $0xc0] sm:$0xff]   ;;  %v6646_v16 = vld [vmem:[%s8230_s7 + $0xd8] sm:$0xff]  }
 0x508   :  { %v2905_v45 = vadd.f32 %v2903_v7, %v2897_v28  ;;  %v2904_v15 = vadd.f32 %v2903_v7, %v2896_v30  ;;  %v2906_v32 = vadd.f32 %v2903_v7, %v2898_v55  ;;  %v2907_v8 = vadd.f32 %v2903_v7, %v2899_v39  ;;  %v6647_v28 = vld [vmem:[%s8230_s7 + $0xe0] sm:$0xff]   ;;  %v6648_v30 = vld [vmem:[%s8230_s7 + $0xe8] sm:$0xff]   ;;  %v6649_v55 = vld [vmem:[%s8230_s7 + $0xf0] sm:$0xff]  }
 0x509   :  { %v6650_v39 = vld [vmem:[%s8230_s7 + $0xf8] sm:$0xff]   ;;  %v6651_v7 = vld [vmem:[%s8230_s7 + $0x100] sm:$0xff]  }
 0x50a   :  { %v2909_v34 = vmax.f32 %v2905_v45, 0.0  ;;  %v2908_v59 = vmax.f32 %v2904_v15, 0.0  ;;  %v2910_v63 = vmax.f32 %v2906_v32, 0.0  ;;  %v2911_v37 = vmax.f32 %v2907_v8, 0.0  ;;  %v6652_v15 = vld [vmem:[%s8230_s7 + $0x108] sm:$0xff]   ;;  %v6653_v32 = vld [vmem:[%s8230_s7 + $0x110] sm:$0xff]  }
 0x50b   :  { %v6654_v8 = vld [vmem:[%s8230_s7 + $0x118] sm:$0xff]  }
 0x50c   :  { %v2912_v43 = vpack.c.bf16 %v2909_v34, %v2908_v59  ;;  %v2913_v31 = vpack.c.bf16 %v2911_v37, %v2910_v63  ;;  %v6655_v34 = vld [vmem:[%s8230_s7 + $0x120] sm:$0xff]   ;;  %v6656_v59 = vld [vmem:[%s8230_s7 + $0x128] sm:$0xff]   ;;  %v6657_v63 = vld [vmem:[%s8230_s7 + $0x130] sm:$0xff]  }
 0x50d   :  { %v6658_v37 = vld [vmem:[%s8230_s7 + $0x138] sm:$0xff]  }
 0x50e   :  { %6053 = vmatpush3.bf16.msra.mxu0 %v2912_v43 }
 0x50f   :  { %6054 = vmatprep.subr.bf16.mxu0 %v6755_v9 }
 0x512   :  { %6055 = vmatpush3.bf16.msra.mxu0 %v2913_v31 }
 0x513   :  { %6322 = vmatprep.subr.bf16.mxu0 %v6755_v9 }
 0x515   :  { %6057 = vmatmul.mubr.msk.bf16.vlgmr.msra.gmra.mrb[20].mxu0 %vm2946_vm1, %v6614_v5 }
 0x516   :  { %6060 = vmatprep.mubr.msk.bf16.mxu0 %vm6756_vm0, %v6755_v9 }
 0x51d   :  { %6061 = vmatmul.mubr.msk.bf16.gmra.mrb[24].mxu0 %vm2946_vm1, %v6615_v38  ;;  %v6659_v38 = vld [vmem:[%s8230_s7 + $0x140] sm:$0xff]  }
 0x51e   :  { %6064 = vmatprep.mubr.msk.bf16.mxu0 %vm6756_vm0, %v6755_v9 }
 0x525   :  { %6065 = vmatmul.mubr.msk.bf16.gmra.mrb[28].mxu0 %vm2946_vm1, %v6616_v42 }
 0x526   :  { %6068 = vmatprep.mubr.msk.bf16.mxu0 %vm6756_vm0, %v6755_v9 }
 0x52d   :  { %6069 = vmatmul.mubr.msk.bf16.gmra.mrb[32].mxu0 %vm2946_vm1, %v6619_v49  ;;  %v6660_v49 = vld [vmem:[%s8230_s7 + $0x148] sm:$0xff]  }
 0x52e   :  { %6072 = vmatprep.mubr.msk.bf16.mxu0 %vm6756_vm0, %v6755_v9 }
 0x535   :  { %6073 = vmatmul.mubr.msk.bf16.gmra.mrb[36].mxu0 %vm2946_vm1, %v6636_v19  ;;  %v6662_v19 = vld [vmem:[%s8230_s7 + $0x158] sm:$0xff]  }
 0x536   :  { %6338 = vmatprep.mubr.msk.bf16.mxu0 %vm6756_vm0, %v6755_v9 }
 0x5e8   :  { %v2996_v18 = vpop.f32.mrb[20].mxu0 }
 0x5e9   :  { %v6058_v41 = vpop.f32.mrb[21].mxu0 }
 0x5ea   :  { %v2999_v44 = vpop.f32.mrb[22].mxu0  ;;  %v6664_v41 = vld [vmem:[%s8230_s7 + $0x168] sm:$0xff]  }
 0x5eb   :  { %v3034_v48 = vpack.c.bf16 %v2999_v44, %v2996_v18  ;;  %v6059_v54 = vpop.f32.mrb[23].mxu0  ;;  %v6663_v18 = vld [vmem:[%s8230_s7 + $0x160] sm:$0xff]   ;;  %v6665_v44 = vld [vmem:[%s8230_s7 + $0x170] sm:$0xff]  }
 0x5ec   :  { %v6667_v54 = vld [vmem:[%s8230_s7 + $0x180] sm:$0xff]  }
 0x5ed   :  { %v3073_v56 = vrot.slane %v3034_v48, 4 }
 0x5ef   :  { %6093 = vmatmul.mubr.bf16.vlgmr.msra.gmra.mrb[68].mxu1 %v3073_v56  ;;  %v6668_v56 = vld [vmem:[%s8230_s7 + $0x188] sm:$0xff]  }
 0x5f0   :  { %6097 = vmatpush3.bf16.msra.mxu1 %v6626_v3  ;;  %6112 = vmatprep.mubr.msk.bf16.mxu1 %vm6756_vm0, %v6755_v9  ;;  %v3004_v13 = vpop.f32.mrb[24].mxu0 }
 0x5f1   :  { %6098 = vmatprep.subr.bf16.mxu1 %v6755_v9  ;;  %v6062_v53 = vpop.f32.mrb[25].mxu0 }
 0x5f2   :  { %v3007_v61 = vpop.f32.mrb[26].mxu0  ;;  %v6671_v53 = vld [vmem:[%s8230_s7 + $0x1a0] sm:$0xff]  }
 0x5f3   :  { %v7781_v57 = vpack.c.bf16 %v3007_v61, %v3004_v13  ;;  %v6063_v60 = vpop.f32.mrb[27].mxu0  ;;  %v6670_v13 = vld [vmem:[%s8230_s7 + $0x198] sm:$0xff]   ;;  %v6672_v61 = vld [vmem:[%s8230_s7 + $0x1a8] sm:$0xff]  }
 0x5f4   :  { %6099 = vmatpush3.bf16.msra.mxu1 %v6627_v11  ;;  %v6669_v11 = vld [vmem:[%s8230_s7 + $0x190] sm:$0xff]   ;;  %v6674_v60 = vld [vmem:[%s8230_s7 + $0x1b8] sm:$0xff]  }
 0x5f5   :  { %6100 = vmatprep.subr.bf16.mxu1 %v6755_v9  ;;  %v3375_v45 = vrot.slane %v7781_v57, 4 }
 0x5f8   :  { %6101 = vmatpush3.bf16.msra.mxu1 %v6628_v1  ;;  %v3012_v14 = vpop.f32.mrb[28].mxu0  ;;  %v6675_v1 = vld [vmem:[%s8230_s7 + $0x1c0] sm:$0xff]  }
 0x5f9   :  { %6102 = vmatprep.subr.bf16.mxu1 %v6755_v9  ;;  %v6066_v40 = vpop.f32.mrb[29].mxu0 }
 0x5fa   :  { %v3015_v22 = vpop.f32.mrb[30].mxu0  ;;  %v6678_v40 = vld [vmem:[%s8230_s7 + $0x1d8] sm:$0xff]  }
 0x5fb   :  { %v7791_v58 = vpack.c.bf16 %v3015_v22, %v3012_v14  ;;  %v6067_v35 = vpop.f32.mrb[31].mxu0  ;;  %v6677_v14 = vld [vmem:[%s8230_s7 + $0x1d0] sm:$0xff]   ;;  %v6679_v22 = vld [vmem:[%s8230_s7 + $0x1e0] sm:$0xff]  }
 0x5fc   :  { %6103 = vmatpush3.bf16.msra.mxu1 %v6629_v2  ;;  %v6676_v2 = vld [vmem:[%s8230_s7 + $0x1c8] sm:$0xff]   ;;  %v6681_v35 = vld [vmem:[%s8230_s7 + $0x1f0] sm:$0xff]  }
 0x5fd   :  { %6104 = vmatprep.subr.bf16.mxu1 %v6755_v9  ;;  %v3590_v3 = vrot.slane %v7791_v58, 4 }
 0x600   :  { %6105 = vmatpush3.bf16.msra.mxu1 %v6630_v62  ;;  %v3020_v29 = vpop.f32.mrb[32].mxu0  ;;  %v6682_v62 = vld [vmem:[%s8230_s7 + $0x1f8] sm:$0xff]  }
 0x601   :  { %6106 = vmatprep.subr.bf16.mxu1 %v6755_v9  ;;  %v6070_v47 = vpop.f32.mrb[33].mxu0 }
 0x602   :  { %v3023_v17 = vpop.f32.mrb[34].mxu0  ;;  %v6694_v47 = vld [vmem:[%s8233_s10 + $0xc0] sm:$0xff]  }
 0x603   :  { %v7843_v4 = vpack.c.bf16 %v3023_v17, %v3020_v29  ;;  %v6071_v21 = vpop.f32.mrb[35].mxu0  ;;  %v6691_v29 = vld [vmem:[%s8232_s9] sm:$0xff]   ;;  %6323 = vmatpush3.bf16.msra.mxu0 %v6694_v47  ;;  %v6698_v17 = vld [vmem:[%s8233_s10 + $0xd0] sm:$0xff]  }
 0x604   :  { %6107 = vmatpush3.bf16.msra.mxu1 %v6631_v0  ;;  %v6683_v0 = vld [vmem:[%s8230_s7 + $0x200] sm:$0xff]   ;;  %6324 = vmatprep.subr.bf16.mxu0 %v6755_v9  ;;  %v6711_v47 = vld [vmem:[%s8233_s10 + $0x10] sm:$0xff]  }
 0x605   :  { %6108 = vmatprep.subr.bf16.mxu1 %v6755_v9  ;;  %v6702_v21 = vld [vmem:[%s8233_s10 + $0xe0] sm:$0xff]  }
 0x608   :  { %6109 = vmatpush3.bf16.msra.mxu1 %v6632_v6  ;;  %v7915_v43 = vpop.f32.mrb[36].mxu0  ;;  %v3805_v6 = vrot.slane %v7843_v4, 4 }
 0x609   :  { %6110 = vmatprep.subr.bf16.mxu1 %v6755_v9  ;;  %v6074_v31 = vpop.f32.mrb[37].mxu0 }
 0x60a   :  { %v3031_v5 = vpop.f32.mrb[38].mxu0 }
 0x60b   :  { %v6075_v42 = vpop.f32.mrb[39].mxu0 }
 0x60c   :  { %6111 = vmatpush3.bf16.msra.mxu1 %v6633_v36  ;;  %v6684_v36 = vld [vmem:[%s8230_s7 + $0x208] sm:$0xff]  }
 0x60d   :  { %6116 = vmatprep.subr.bf16.mxu1 %v6755_v9 }
 0x60f   :  { %6113 = vmatmul.mubr.bf16.vlgmr.msra.gmra.mrb[68].mxu1 %v3034_v48  ;;  %v6666_v48 = vld [vmem:[%s8230_s7 + $0x178] sm:$0xff]  }
 0x610   :  { %6117 = vmatpush3.bf16.msra.mxu1 %v6634_v10  ;;  %6132 = vmatprep.mubr.msk.bf16.mxu1 %vm6756_vm0, %v6755_v9  ;;  %v6685_v10 = vld [vmem:[%s8230_s7 + $0x210] sm:$0xff]  }
 0x611   :  { %6118 = vmatprep.subr.bf16.mxu1 %v6755_v9 }
 0x614   :  { %6119 = vmatpush3.bf16.msra.mxu1 %v6635_v52  ;;  %v6686_v52 = vld [vmem:[%s8230_s7 + $0x218] sm:$0xff]  }
 0x615   :  { %6120 = vmatprep.subr.bf16.mxu1 %v6755_v9 }
 0x618   :  { %6121 = vmatpush3.bf16.msra.mxu1 %v6637_v12  ;;  %v6687_v12 = vld [vmem:[%s8230_s7 + $0x220] sm:$0xff]  }
 0x619   :  { %6122 = vmatprep.subr.bf16.mxu1 %v6755_v9 }
 0x61c   :  { %6123 = vmatpush3.bf16.msra.mxu1 %v6638_v25  ;;  %v6688_v25 = vld [vmem:[%s8230_s7 + $0x228] sm:$0xff]  }
 0x61d   :  { %6124 = vmatprep.subr.bf16.mxu1 %v6755_v9 }
 0x620   :  { %6125 = vmatpush3.bf16.msra.mxu1 %v6639_v27  ;;  %v6689_v27 = vld [vmem:[%s8230_s7 + $0x230] sm:$0xff]  }
 0x621   :  { %6126 = vmatprep.subr.bf16.mxu1 %v6755_v9 }
 0x624   :  { %6127 = vmatpush3.bf16.msra.mxu1 %v6640_v51  ;;  %v6690_v51 = vld [vmem:[%s8230_s7 + $0x238] sm:$0xff]  }
 0x625   :  { %6128 = vmatprep.subr.bf16.mxu1 %v6755_v9 }
 0x628   :  { %6129 = vmatpush3.bf16.msra.mxu1 %v6641_v20  ;;  %v3038_v20 = vpack.c.bf16 %v7915_v43, %v7915_v43 }
 0x629   :  { %6130 = vmatprep.subr.bf16.mxu1 %v6755_v9 }
 0x62c   :  { %6131 = vmatpush3.bf16.msra.mxu1 %v6642_v26  ;;  %v6696_v26 = vld [vmem:[%s8233_s10 + $0xc8] sm:$0xff]  }
 0x62d   :  { %6136 = vmatprep.subr.bf16.mxu1 %v6755_v9  ;;  %6325 = vmatpush3.bf16.msra.mxu0 %v6696_v26  ;;  %v6712_v26 = vld [vmem:[%s8233_s10 + $0x18] sm:$0xff]  }
 0x62e   :  { %6326 = vmatprep.subr.bf16.mxu0 %v6755_v9 }
 0x62f   :  { %6133 = vmatmul.mubr.bf16.vlgmr.msra.gmra.mrb[68].mxu1 %v7781_v57  ;;  %v6673_v57 = vld [vmem:[%s8230_s7 + $0x1b0] sm:$0xff]  }
 0x630   :  { %6137 = vmatpush3.bf16.msra.mxu1 %v6643_v23  ;;  %6152 = vmatprep.mubr.msk.bf16.mxu1 %vm6756_vm0, %v6755_v9  ;;  %v6704_v23 = vld [vmem:[%s8233_s10 + $0xe8] sm:$0xff]  }
 0x631   :  { %6138 = vmatprep.subr.bf16.mxu1 %v6755_v9  ;;  %6327 = vmatpush3.bf16.msra.mxu0 %v6698_v17  ;;  %v6713_v17 = vld [vmem:[%s8233_s10 + $0x20] sm:$0xff]  }
 0x632   :  { %6328 = vmatprep.subr.bf16.mxu0 %v6755_v9 }
 0x634   :  { %6139 = vmatpush3.bf16.msra.mxu1 %v6644_v24 }
 0x635   :  { %6140 = vmatprep.subr.bf16.mxu1 %v6755_v9 }
 0x638   :  { %6141 = vmatpush3.bf16.msra.mxu1 %v6645_v33 }
 0x639   :  { %6142 = vmatprep.subr.bf16.mxu1 %v6755_v9 }
 0x63c   :  { %6143 = vmatpush3.bf16.msra.mxu1 %v6646_v16 }
 0x63d   :  { %6144 = vmatprep.subr.bf16.mxu1 %v6755_v9 }
 0x640   :  { %6145 = vmatpush3.bf16.msra.mxu1 %v6647_v28 }
 0x641   :  { %6146 = vmatprep.subr.bf16.mxu1 %v6755_v9 }
 0x644   :  { %6147 = vmatpush3.bf16.msra.mxu1 %v6648_v30 }
 0x645   :  { %6148 = vmatprep.subr.bf16.mxu1 %v6755_v9 }
 0x648   :  { %6149 = vmatpush3.bf16.msra.mxu1 %v6649_v55 }
 0x649   :  { %6150 = vmatprep.subr.bf16.mxu1 %v6755_v9 }
 0x64c   :  { %6151 = vmatpush3.bf16.msra.mxu1 %v6650_v39 }
 0x64d   :  { %6156 = vmatprep.subr.bf16.mxu1 %v6755_v9 }
 0x64f   :  { %6153 = vmatmul.mubr.bf16.vlgmr.msra.gmra.mrb[68].mxu1 %v3375_v45 }
 0x650   :  { %6157 = vmatpush3.bf16.msra.mxu1 %v6651_v7  ;;  %6172 = vmatprep.mubr.msk.bf16.mxu1 %vm6756_vm0, %v6755_v9 }
 0x651   :  { %6158 = vmatprep.subr.bf16.mxu1 %v6755_v9 }
 0x654   :  { %6159 = vmatpush3.bf16.msra.mxu1 %v6652_v15 }
 0x655   :  { %6160 = vmatprep.subr.bf16.mxu1 %v6755_v9 }
 0x658   :  { %6161 = vmatpush3.bf16.msra.mxu1 %v6653_v32 }
 0x659   :  { %6162 = vmatprep.subr.bf16.mxu1 %v6755_v9 }
 0x65c   :  { %6163 = vmatpush3.bf16.msra.mxu1 %v6654_v8 }
 0x65d   :  { %6164 = vmatprep.subr.bf16.mxu1 %v6755_v9 }
 0x660   :  { %6165 = vmatpush3.bf16.msra.mxu1 %v6655_v34 }
 0x661   :  { %6166 = vmatprep.subr.bf16.mxu1 %v6755_v9 }
 0x664   :  { %6167 = vmatpush3.bf16.msra.mxu1 %v6656_v59 }
 0x665   :  { %6168 = vmatprep.subr.bf16.mxu1 %v6755_v9 }
 0x668   :  { %6169 = vmatpush3.bf16.msra.mxu1 %v6657_v63 }
 0x669   :  { %6170 = vmatprep.subr.bf16.mxu1 %v6755_v9 }
 0x66c   :  { %6171 = vmatpush3.bf16.msra.mxu1 %v6658_v37 }
 0x66d   :  { %6176 = vmatprep.subr.bf16.mxu1 %v6755_v9 }
 0x66f   :  { %6173 = vmatmul.mubr.bf16.vlgmr.msra.gmra.mrb[68].mxu1 %v7791_v58  ;;  %v6680_v58 = vld [vmem:[%s8230_s7 + $0x1e8] sm:$0xff]  }
 0x670   :  { %6177 = vmatpush3.bf16.msra.mxu1 %v6659_v38  ;;  %6192 = vmatprep.mubr.msk.bf16.mxu1 %vm6756_vm0, %v6755_v9 }
 0x671   :  { %6178 = vmatprep.subr.bf16.mxu1 %v6755_v9 }
 0x674   :  { %6179 = vmatpush3.bf16.msra.mxu1 %v6660_v49 }
 0x675   :  { %6180 = vmatprep.subr.bf16.mxu1 %v6755_v9 }
 0x678   :  { %6181 = vmatpush3.bf16.msra.mxu1 %v6661_v50 }
 0x679   :  { %6182 = vmatprep.subr.bf16.mxu1 %v6755_v9 }
 0x67c   :  { %6183 = vmatpush3.bf16.msra.mxu1 %v6662_v19  ;;  %v4020_v19 = vld [vmem:[%s8231_s8] sm:$0x1] }
 0x67d   :  { %6184 = vmatprep.subr.bf16.mxu1 %v6755_v9 }
 0x680   :  { %6185 = vmatpush3.bf16.msra.mxu1 %v6663_v18 }
 0x681   :  { %6186 = vmatprep.subr.bf16.mxu1 %v6755_v9 }
 0x684   :  { %6187 = vmatpush3.bf16.msra.mxu1 %v6664_v41 }
 0x685   :  { %6188 = vmatprep.subr.bf16.mxu1 %v6755_v9 }
 0x688   :  { %6189 = vmatpush3.bf16.msra.mxu1 %v6665_v44  ;;  %v4024_v44 = vld [vmem:[%s8231_s8 + $0x1] sm:$0x1] }
 0x689   :  { %6190 = vmatprep.subr.bf16.mxu1 %v6755_v9 }
 0x68c   :  { %6191 = vmatpush3.bf16.msra.mxu1 %v6666_v48 }
 0x68d   :  { %6196 = vmatprep.subr.bf16.mxu1 %v6755_v9 }
 0x68f   :  { %6193 = vmatmul.mubr.bf16.vlgmr.msra.gmra.mrb[68].mxu1 %v3590_v3 }
 0x690   :  { %6197 = vmatpush3.bf16.msra.mxu1 %v6667_v54  ;;  %6212 = vmatprep.mubr.msk.bf16.mxu1 %vm6756_vm0, %v6755_v9 }
 0x691   :  { %6198 = vmatprep.subr.bf16.mxu1 %v6755_v9 }
 0x694   :  { %6199 = vmatpush3.bf16.msra.mxu1 %v6668_v56 }
 0x695   :  { %6200 = vmatprep.subr.bf16.mxu1 %v6755_v9 }
 0x698   :  { %6201 = vmatpush3.bf16.msra.mxu1 %v6669_v11 }
 0x699   :  { %6202 = vmatprep.subr.bf16.mxu1 %v6755_v9 }
 0x69c   :  { %6203 = vmatpush3.bf16.msra.mxu1 %v6670_v13 }
 0x69d   :  { %6204 = vmatprep.subr.bf16.mxu1 %v6755_v9 }
 0x6a0   :  { %6205 = vmatpush3.bf16.msra.mxu1 %v6671_v53 }
 0x6a1   :  { %6206 = vmatprep.subr.bf16.mxu1 %v6755_v9 }
 0x6a4   :  { %6207 = vmatpush3.bf16.msra.mxu1 %v6672_v61 }
 0x6a5   :  { %6208 = vmatprep.subr.bf16.mxu1 %v6755_v9 }
 0x6a8   :  { %6209 = vmatpush3.bf16.msra.mxu1 %v6673_v57 }
 0x6a9   :  { %6210 = vmatprep.subr.bf16.mxu1 %v6755_v9 }
 0x6ac   :  { %6211 = vmatpush3.bf16.msra.mxu1 %v6674_v60  ;;  %v6692_v60 = vld [vmem:[%s8232_s9 + $0x8] sm:$0xff]  }
 0x6ad   :  { %6216 = vmatprep.subr.bf16.mxu1 %v6755_v9 }
 0x6af   :  { %6213 = vmatmul.mubr.bf16.vlgmr.msra.gmra.mrb[68].mxu1 %v7843_v4  ;;  %v6700_v4 = vld [vmem:[%s8233_s10 + $0xd8] sm:$0xff]  }
 0x6b0   :  { %6217 = vmatpush3.bf16.msra.mxu1 %v6675_v1  ;;  %6232 = vmatprep.mubr.msk.bf16.mxu1 %vm6756_vm0, %v6755_v9  ;;  %v6693_v1 = vld [vmem:[%s8233_s10 + $0x40] sm:$0xff]  }
 0x6b1   :  { %6218 = vmatprep.subr.bf16.mxu1 %v6755_v9  ;;  %6329 = vmatpush3.bf16.msra.mxu0 %v6700_v4  ;;  %v6714_v4 = vld [vmem:[%s8233_s10 + $0x28] sm:$0xff]  }
 0x6b2   :  { %6330 = vmatprep.subr.bf16.mxu0 %v6755_v9 }
 0x6b4   :  { %6219 = vmatpush3.bf16.msra.mxu1 %v6676_v2  ;;  %v6697_v2 = vld [vmem:[%s8233_s10 + $0x50] sm:$0xff]  }
 0x6b5   :  { %6220 = vmatprep.subr.bf16.mxu1 %v6755_v9  ;;  %6331 = vmatpush3.bf16.msra.mxu0 %v6702_v21  ;;  %v6715_v21 = vld [vmem:[%s8233_s10 + $0x30] sm:$0xff]  }
 0x6b6   :  { %6332 = vmatprep.subr.bf16.mxu0 %v6755_v9 }
 0x6b8   :  { %6221 = vmatpush3.bf16.msra.mxu1 %v6677_v14  ;;  %v6699_v14 = vld [vmem:[%s8233_s10 + $0x58] sm:$0xff]  }
 0x6b9   :  { %6222 = vmatprep.subr.bf16.mxu1 %v6755_v9  ;;  %6333 = vmatpush3.bf16.msra.mxu0 %v6704_v23  ;;  %v6716_v23 = vld [vmem:[%s8233_s10 + $0x38] sm:$0xff]  }
 0x6ba   :  { %6334 = vmatprep.subr.bf16.mxu0 %v6755_v9 }
 0x6bc   :  { %6223 = vmatpush3.bf16.msra.mxu1 %v6678_v40  ;;  %v6701_v40 = vld [vmem:[%s8233_s10 + $0x60] sm:$0xff]  }
 0x6bd   :  { %6224 = vmatprep.subr.bf16.mxu1 %v6755_v9 }
 0x6c0   :  { %6225 = vmatpush3.bf16.msra.mxu1 %v6679_v22  ;;  %v6703_v22 = vld [vmem:[%s8233_s10 + $0x68] sm:$0xff]  }
 0x6c1   :  { %6226 = vmatprep.subr.bf16.mxu1 %v6755_v9 }
 0x6c4   :  { %6227 = vmatpush3.bf16.msra.mxu1 %v6680_v58  ;;  %v6705_v58 = vld [vmem:[%s8233_s10 + $0x70] sm:$0xff]  }
 0x6c5   :  { %6228 = vmatprep.subr.bf16.mxu1 %v6755_v9 }
 0x6c8   :  { %6229 = vmatpush3.bf16.msra.mxu1 %v6681_v35  ;;  %v6706_v35 = vld [vmem:[%s8233_s10 + $0xf0] sm:$0xff]  }
 0x6c9   :  { %6230 = vmatprep.subr.bf16.mxu1 %v6755_v9  ;;  %6335 = vmatpush3.bf16.msra.mxu0 %v6706_v35 }
 0x6ca   :  { %6336 = vmatprep.subr.bf16.mxu0 %v6755_v9 }
 0x6cc   :  { %6231 = vmatpush3.bf16.msra.mxu1 %v6682_v62  ;;  %v6707_v62 = vld [vmem:[%s8233_s10 + $0x78] sm:$0xff]  }
 0x6cd   :  { %6236 = vmatprep.subr.bf16.mxu1 %v6755_v9 }
 0x6cf   :  { %6233 = vmatmul.mubr.bf16.vlgmr.msra.gmra.mrb[68].mxu1 %v3805_v6 }
 0x6d0   :  { %6237 = vmatpush3.bf16.msra.mxu1 %v6683_v0  ;;  %6252 = vmatprep.mubr.msk.bf16.mxu1 %vm6756_vm0, %v6755_v9  ;;  %v6708_v0 = vld [vmem:[%s8233_s10 + $0xf8] sm:$0xff]  }
 0x6d1   :  { %6238 = vmatprep.subr.bf16.mxu1 %v6755_v9  ;;  %6337 = vmatpush3.bf16.msra.mxu0 %v6708_v0 }
 0x6d4   :  { %6239 = vmatpush3.bf16.msra.mxu1 %v6684_v36 }
 0x6d5   :  { %6240 = vmatprep.subr.bf16.mxu1 %v6755_v9 }
 0x6d8   :  { %6241 = vmatpush3.bf16.msra.mxu1 %v6685_v10 }
 0x6d9   :  { %6242 = vmatprep.subr.bf16.mxu1 %v6755_v9 }
 0x6dc   :  { %6243 = vmatpush3.bf16.msra.mxu1 %v6686_v52 }
 0x6dd   :  { %6244 = vmatprep.subr.bf16.mxu1 %v6755_v9 }
 0x6e0   :  { %6245 = vmatpush3.bf16.msra.mxu1 %v6687_v12 }
 0x6e1   :  { %6246 = vmatprep.subr.bf16.mxu1 %v6755_v9 }
 0x6e4   :  { %6247 = vmatpush3.bf16.msra.mxu1 %v6688_v25 }
 0x6e5   :  { %6248 = vmatprep.subr.bf16.mxu1 %v6755_v9 }
 0x6e8   :  { %6249 = vmatpush3.bf16.msra.mxu1 %v6689_v27 }
 0x6e9   :  { %6250 = vmatprep.subr.bf16.mxu1 %v6755_v9 }
 0x6ec   :  { %6251 = vmatpush3.bf16.msra.mxu1 %v6690_v51  ;;  %v6709_v51 = vld [vmem:[%s8233_s10] sm:$0xff]  }
 0x6ef   :  { %6253 = vmatmul.mubr.bf16.vlgmr.msra.gmra.mrb[68].mxu1 %v3038_v20 }
 0x6f0   :  { %6258 = vmatprep.mubr.msk.bf16.mxu1 %vm4053_vm2, %v6691_v29  ;;  %v6710_v29 = vld [vmem:[%s8233_s10 + $0x8] sm:$0xff]  }
 0x7c2   :  { %v3995_v24 = vpop.f32.mrb[68].mxu1 }
 0x7c3   :  { %v4002_v33 = vrot.slane %v3995_v24, 4  ;;  %v4009_v16 = vmul.f32 %v3995_v24, %v3995_v24  ;;  %v6254_v28 = vpop.f32.mrb[69].mxu1 }
 0x7c4   :  { %v3998_v30 = vpop.f32.mrb[70].mxu1  ;;  %v6720_v28 = vld [vmem:[%s8233_s10 + $0x98] sm:$0xff]  }
 0x7c5   :  { %v4003_v55 = vadd.f32 %v4002_v33, %v3995_v24  ;;  %v4010_v39 = vrot.slane %v4009_v16, 4  ;;  %v6255_v7 = vpop.f32.mrb[71].mxu1  ;;  %v6718_v33 = vld [vmem:[%s8233_s10 + $0x88] sm:$0xff]   ;;  %v6721_v30 = vld [vmem:[%s8233_s10 + $0xa0] sm:$0xff]  }
 0x7c6   :  { %v6724_v7 = vld [vmem:[%s8233_s10 + $0xb8] sm:$0xff]  }
 0x7c7   :  { %v4004_v45 = vrot.slane %v4003_v55, 2  ;;  %v4011_v15 = vadd.f32 %v4010_v39, %v4009_v16  ;;  %v6719_v16 = vld [vmem:[%s8233_s10 + $0x90] sm:$0xff]  }
 0x7c8   :  { %v6723_v39 = vld [vmem:[%s8233_s10 + $0xb0] sm:$0xff]  }
 0x7c9   :  { %v4005_v32 = vadd.f32 %v4004_v45, %v4003_v55  ;;  %v4012_v8 = vrot.slane %v4011_v15, 2  ;;  %v6722_v55 = vld [vmem:[%s8233_s10 + $0xa8] sm:$0xff]  }
 0x7cb   :  { %v4006_v34 = vrot.slane %v4005_v32, 1  ;;  %v4013_v59 = vadd.f32 %v4012_v8, %v4011_v15 }
 0x7cd   :  { %v4007_v63 = vadd.f32 %v4006_v34, %v4005_v32  ;;  %v4014_v37 = vrot.slane %v4013_v59, 1 }
 0x7cf   :  { %v4008_v43 = vmul.f32 0.125, %v4007_v63  ;;  %v4015_v31 = vadd.f32 %v4014_v37, %v4013_v59 }
 0x7d1   :  { %v4016_v5 = vmul.f32 0.125, %v4015_v31  ;;  %v4017_v38 = vmul.f32 %v4008_v43, %v4008_v43 }
 0x7d3   :  { %v4018_v42 = vsub.f32 %v4016_v5, %v4017_v38 }
 0x7d5   :  { %v4019_v49 = vmax.f32 %v4018_v42, 0.0 }
 0x7d7   :  { %v4021_v50 = vadd.f32 1e-05, %v4019_v49 }
 0x7d9   :  { %6729 = vrsqrt.f32 %v4021_v50 }
 0x7e3   :  { %v6730_v18 = vpop.eup %6729 }
 0x7e4   :  { %v4023_v41 = vmul.f32 %v6730_v18, %v4020_v19 }
 0x7e6   :  { %v4025_v48 = vmul.f32 %v4023_v41, %v4008_v43  ;;  %v4030_v54 = vrot.slane %v4023_v41, %v6955_v46 }
 0x7e8   :  { %v4026_v3 = vsub.f32 %v4024_v44, %v4025_v48  ;;  %v4031_v56 = vmul.f32 %v4030_v54, %v3995_v24  ;;  %v6717_v24 = vld [vmem:[%s8233_s10 + $0x80] sm:$0xff]  }
 0x7ea   :  { %v4035_v11 = vrot.slane %v4026_v3, %v6955_v46  ;;  %v6695_v46 = vld [vmem:[%s8233_s10 + $0x48] sm:$0xff]  }
 0x7ec   :  { %v4036_v13 = vadd.f32 %v4035_v11, %v4031_v56 }
 0x7ee   :  { %v4037_v53 = vmax.f32 %v4036_v13, 0.0 }
 0x7f0   :  { %v4038_v61 = vpack.c.bf16 %v4037_v53, %v4037_v53 }
 0x7f2   :  { %6434 = vmatprep.subr.msk.bf16.mxu1 %vm4060_vm3, %v4038_v61  ;;  %v4062_v57 = vsel %vm4060_vm3, %v4038_v61, 0 }
 0x7f3   :  { %6257 = vmatpush3.bf16.msra.mxu1 %v4062_v57 }
 0x7f4   :  { %6262 = vmatprep.subr.bf16.mxu1 %v6755_v9 }
 0x7f6   :  { %6259 = vmatmul.mubr.msk.bf16.vlgmr.msra.gmra.mrb[72].mxu1 %vm4053_vm2, %v6692_v60 }
 0x7f7   :  { %6263 = vmatpush3.bf16.msra.mxu1 %v6693_v1  ;;  %6278 = vmatprep.mubr.msk.bf16.mxu1 %vm6756_vm0, %v6755_v9 }
 0x7f8   :  { %6264 = vmatprep.subr.bf16.mxu1 %v6755_v9 }
 0x7fb   :  { %6265 = vmatpush3.bf16.msra.mxu1 %v6695_v46 }
 0x7fc   :  { %6266 = vmatprep.subr.bf16.mxu1 %v6755_v9 }
 0x7ff   :  { %6267 = vmatpush3.bf16.msra.mxu1 %v6697_v2 }
 0x800   :  { %6268 = vmatprep.subr.bf16.mxu1 %v6755_v9 }
 0x803   :  { %6269 = vmatpush3.bf16.msra.mxu1 %v6699_v14 }
 0x804   :  { %6270 = vmatprep.subr.bf16.mxu1 %v6755_v9 }
 0x807   :  { %6271 = vmatpush3.bf16.msra.mxu1 %v6701_v40 }
 0x808   :  { %6272 = vmatprep.subr.bf16.mxu1 %v6755_v9 }
 0x80b   :  { %6273 = vmatpush3.bf16.msra.mxu1 %v6703_v22 }
 0x80c   :  { %6274 = vmatprep.subr.bf16.mxu1 %v6755_v9 }
 0x80f   :  { %6275 = vmatpush3.bf16.msra.mxu1 %v6705_v58 }
 0x810   :  { %6276 = vmatprep.subr.bf16.mxu1 %v6755_v9 }
 0x813   :  { %6277 = vmatpush3.bf16.msra.mxu1 %v6707_v62 }
 0x814   :  { %6282 = vmatprep.subr.bf16.mxu1 %v6755_v9 }
 0x8c9   :  { %v6260_v6 = vpop.f32.mrb[72].mxu1 }
 0x8ca   :  { %v4098_v36 = vpop.f32.mrb[73].mxu1 }
 0x8cb   :  { %v6261_v10 = vpop.f32.mrb[74].mxu1 }
 0x8cc   :  { %v4114_v52 = vpack.c.bf16 %v6261_v10, %v6260_v6  ;;  %v4101_v12 = vpop.f32.mrb[75].mxu1 }
 0x8cd   :  { %v4113_v25 = vpack.c.bf16 %v4101_v12, %v4098_v36 }
 0x8ce   :  { %v4451_v27 = vrot.slane %v4114_v52, 4 }
 0x8cf   :  { %v4149_v20 = vrot.slane %v4113_v25, 4 }
 0x8d0   :  { %6339 = vmatmul.mubr.bf16.vlgmr.msra.gmra.mrb[40].mxu0 %v4451_v27 }
 0x8d1   :  { %6279 = vmatmul.mubr.bf16.vlgmr.msra.gmra.mrb[76].mxu1 %v4149_v20 }
 0x8d2   :  { %6283 = vmatpush3.bf16.msra.mxu1 %v6709_v51  ;;  %6298 = vmatprep.mubr.msk.bf16.mxu1 %vm6756_vm0, %v6755_v9 }
 0x8d3   :  { %6284 = vmatprep.subr.bf16.mxu1 %v6755_v9 }
 0x8d6   :  { %6285 = vmatpush3.bf16.msra.mxu1 %v6710_v29 }
 0x8d7   :  { %6286 = vmatprep.subr.bf16.mxu1 %v6755_v9 }
 0x8da   :  { %6287 = vmatpush3.bf16.msra.mxu1 %v6711_v47 }
 0x8db   :  { %6288 = vmatprep.subr.bf16.mxu1 %v6755_v9 }
 0x8de   :  { %6289 = vmatpush3.bf16.msra.mxu1 %v6712_v26 }
 0x8df   :  { %6290 = vmatprep.subr.bf16.mxu1 %v6755_v9 }
 0x8e2   :  { %6291 = vmatpush3.bf16.msra.mxu1 %v6713_v17 }
 0x8e3   :  { %6292 = vmatprep.subr.bf16.mxu1 %v6755_v9 }
 0x8e6   :  { %6293 = vmatpush3.bf16.msra.mxu1 %v6714_v4 }
 0x8e7   :  { %6294 = vmatprep.subr.bf16.mxu1 %v6755_v9 }
 0x8ea   :  { %6295 = vmatpush3.bf16.msra.mxu1 %v6715_v21 }
 0x8eb   :  { %6296 = vmatprep.subr.bf16.mxu1 %v6755_v9 }
 0x8ee   :  { %6297 = vmatpush3.bf16.msra.mxu1 %v6716_v23 }
 0x8ef   :  { %6302 = vmatprep.subr.bf16.mxu1 %v6755_v9 }
 0x8f1   :  { %6299 = vmatmul.mubr.bf16.vlgmr.msra.gmra.mrb[80].mxu1 %v4113_v25 }
 0x8f2   :  { %6303 = vmatpush3.bf16.msra.mxu1 %v6717_v24  ;;  %6318 = vmatprep.mubr.msk.bf16.mxu1 %vm6756_vm0, %v6755_v9 }
 0x8f3   :  { %6304 = vmatprep.subr.bf16.mxu1 %v6755_v9 }
 0x8f6   :  { %6305 = vmatpush3.bf16.msra.mxu1 %v6718_v33 }
 0x8f7   :  { %6306 = vmatprep.subr.bf16.mxu1 %v6755_v9 }
 0x8fa   :  { %6307 = vmatpush3.bf16.msra.mxu1 %v6719_v16 }
 0x8fb   :  { %6308 = vmatprep.subr.bf16.mxu1 %v6755_v9 }
 0x8fe   :  { %6309 = vmatpush3.bf16.msra.mxu1 %v6720_v28 }
 0x8ff   :  { %6310 = vmatprep.subr.bf16.mxu1 %v6755_v9 }
 0x902   :  { %6311 = vmatpush3.bf16.msra.mxu1 %v6721_v30 }
 0x903   :  { %6312 = vmatprep.subr.bf16.mxu1 %v6755_v9 }
 0x906   :  { %6313 = vmatpush3.bf16.msra.mxu1 %v6722_v55 }
 0x907   :  { %6314 = vmatprep.subr.bf16.mxu1 %v6755_v9 }
 0x90a   :  { %6315 = vmatpush3.bf16.msra.mxu1 %v6723_v39 }
 0x90b   :  { %6316 = vmatprep.subr.bf16.mxu1 %v6755_v9  ;;  %v5276_v9 = vld [vmem:[%s8234_s11] ss:$0 sm:$0xff] }
 0x90e   :  { %6317 = vmatpush3.bf16.msra.mxu1 %v6724_v7 }
 0x911   :  { %6319 = vmatmul.mubr.bf16.vlgmr.msra.gmra.mrb[84].mxu1 %v4114_v52 }
 0x9a3   :  { %v4535_v45 = vpop.f32.mrb[40].mxu0 }
 0x9a4   :  { %v4233_v15 = vpop.f32.mrb[76].mxu1  ;;  %v6340_v32 = vpop.f32.mrb[41].mxu0 }
 0x9a5   :  { %v6280_v8 = vpop.f32.mrb[77].mxu1  ;;  %v4538_v34 = vpop.f32.mrb[42].mxu0 }
 0x9a6   :  { %v4236_v59 = vpop.f32.mrb[78].mxu1  ;;  %v6341_v63 = vpop.f32.mrb[43].mxu0 }
 0x9a7   :  { %v6281_v37 = vpop.f32.mrb[79].mxu1 }
 0x9c4   :  { %v4321_v43 = vpop.f32.mrb[80].mxu1 }
 0x9c5   :  { %v4322_v31 = vadd.f32 %v4321_v43, %v4233_v15  ;;  %v6300_v5 = vpop.f32.mrb[81].mxu1 }
 0x9c6   :  { %v4324_v38 = vpop.f32.mrb[82].mxu1 }
 0x9c7   :  { %v6301_v42 = vpop.f32.mrb[83].mxu1 }
 0x9e4   :  { %v4426_v49 = vpop.f32.mrb[84].mxu1 }
 0x9e5   :  { %v4432_v50 = vadd.f32 %v4426_v49, %v4322_v31  ;;  %v6320_v19 = vpop.f32.mrb[85].mxu1 }
 0x9e6   :  { %v4429_v18 = vpop.f32.mrb[86].mxu1 }
 0x9e7   :  { %v4541_v41 = vadd.f32 %v4535_v45, %v4432_v50  ;;  %v6321_v44 = vpop.f32.mrb[87].mxu1 }
 0x9e9   :  { %v4549_v48 = vadd.f32 %v5276_v9, %v4541_v41 }
 0x9eb   :  { %4551 = vst.msk [vmem:[#allocation2] sm:$0x3] %vm4550_vm4, %v4549_v48 }
 0x9ec   :  { %6742 = shalt.err (!%p6739_p4)
}
 0x9ed   :  { %s6743_s17 = scalar_lea.hbm %s8235_s12, 32 }
 0x9ee   :  { %p6744_p5 = scmp.ne.s32.totalorder %s8235_s12, %s6743_s17  ;;  %p6747_p6 = scmp.lt.u32.totalorder %s6743_s17, %s8235_s12 }
 0x9f0   :  { %p6749_p7 = pnand %p6747_p6, %p6744_p5 }
 0x9f2   :  { %6752 = shalt.err (!%p6749_p7)
}
 0x9f3   :  { %4561 = dma.vmem_to_hbm [thread:$0]  %s4559_s15, 32, %s8235_s12, [#allocation3]  }
 0x9f4   :  { %6753 = dma.done.wait [#allocation3], 32  }
 0x9f5   :  { %6754 = vsyncadd [#allocation3], 4294967264 }
 0x9f6   :  { %4565 = vsyncpa [#allocation3], 1 }

</bundles_post_ra>
